<compile_context>
chip_gen: v5e
topology: v5e:2x2
jax: 0.10.0
libtpu: 0.0.40
codegen_flags: <defaults>
</compile_context>

<pallas_src>
import functools

import jax
import jax.numpy as jnp
from jax import lax
from jax.experimental import pallas as pl
from jax.experimental.pallas import tpu as pltpu


def _round_up(v, m):
    return (v + m - 1) // m * m


def _triplet_kernel(xm_ref, xn_ref, sqm_ref, sqn_ref, labm_ref, labn_ref,
                    out_ref, pos_acc, neg_acc, *,
                    margin, n_valid, tile_n, mask_cols, gram_dtype):
    """One (row-tile i, column-tile k) step of the pairwise-distance sweep.

    xm_ref  : (TILE, C)  resident row block of x
    xn_ref  : (TILE, C)  streamed column block of x
    sqm_ref : (TILE, 1)  |x_i|^2 for the row block
    sqn_ref : (1, TILE)  |x_j|^2 for the column block
    labm_ref: (TILE, 1)  int32 labels (rows)
    labn_ref: (1, TILE)  int32 labels (columns)
    out_ref : (TILE, 1)  per-row loss, written at the last k step
    pos_acc / neg_acc : (TILE, 1) f32 running max / min of squared distance
    """
    k = pl.program_id(1)
    nk = pl.num_programs(1)

    @pl.when(k == 0)
    def _init():
        pos_acc[...] = jnp.full(pos_acc.shape, -jnp.inf, jnp.float32)
        neg_acc[...] = jnp.full(neg_acc.shape, jnp.inf, jnp.float32)

    # Gram tile on the MXU (optionally bf16 operands, always f32 accumulation).
    gram = lax.dot_general(
        xm_ref[...].astype(gram_dtype), xn_ref[...].astype(gram_dtype),
        (((1,), (1,)), ((), ())),
        preferred_element_type=jnp.float32)                    # (TILE, TILE)

    # Squared pairwise distances for this tile (no sqrt yet).
    d2 = sqm_ref[...] + sqn_ref[...] - 2.0 * gram              # (TILE, TILE)

    # Same-id mask via broadcasted compare (no in-kernel transpose).
    same = labm_ref[...] == labn_ref[...]                      # (TILE, TILE) bool
    diff = jnp.logical_not(same)
    if mask_cols:
        # Exclude zero-padded columns (rows are handled by the wrapper slice).
        col = k * tile_n + lax.broadcasted_iota(jnp.int32, (1, tile_n), 1)
        valid = col < n_valid                                  # (1, TILE)
        same = jnp.logical_and(same, valid)
        diff = jnp.logical_and(diff, valid)

    # Masked max over positives / min over negatives, on squared distances.
    pos = jnp.where(same, d2, -jnp.inf)
    neg = jnp.where(diff, d2, jnp.inf)
    pos_acc[...] = jnp.maximum(pos_acc[...], jnp.max(pos, axis=1, keepdims=True))
    neg_acc[...] = jnp.minimum(neg_acc[...], jnp.min(neg, axis=1, keepdims=True))

    @pl.when(k == nk - 1)
    def _finalize():
        # sqrt is monotonic => hoisting it past the max/min is exact.
        # clamp(min=1e-16) matches the reference and absorbs cancellation noise.
        pos_d = jnp.sqrt(jnp.maximum(pos_acc[...], 1e-16))
        neg_d = jnp.sqrt(jnp.maximum(neg_acc[...], 1e-16))
        # margin_ranking_loss(neg_d, pos_d, y=1) per row = relu(pos_d - neg_d + m)
        out_ref[...] = jnp.maximum(pos_d - neg_d + margin, 0.0)


def triplet_semihard_loss(x, target, margin=0.0, *, size_average=True,
                          tile=128, gram_dtype=jnp.float32):
    """Forward pass of TripletSemihardLoss.

    x: (N, C) float, target: (N,) int.  Returns a scalar.
    tile: row/column tile size (128 everywhere; 256 can help on v7x for large N).
    gram_dtype: set to jnp.bfloat16 on v6e/v7x to halve MXU cycles for the Gram
                matrix (f32 accumulation is kept; elementwise math stays f32).
    """
    n, c = x.shape
    x = x.astype(jnp.float32)
    t = target.astype(jnp.int32)

    n_pad = max(tile, _round_up(n, tile))
    pad = n_pad - n
    if pad:
        x_p = jnp.pad(x, ((0, pad), (0, 0)))
        t_p = jnp.pad(t, (0, pad), constant_values=-1)
    else:
        x_p, t_p = x, t

    # O(N*C) squared row norms once in the wrapper; reused as (N,1) and (1,N)
    # views so the kernel never transposes.
    sq = jnp.sum(x_p * x_p, axis=1)
    sq_col = sq.reshape(n_pad, 1)
    sq_row = sq.reshape(1, n_pad)
    lab_col = t_p.reshape(n_pad, 1)
    lab_row = t_p.reshape(1, n_pad)

    grid = (n_pad // tile, n_pad // tile)
    kernel = functools.partial(
        _triplet_kernel, margin=float(margin), n_valid=n, tile_n=tile,
        mask_cols=(pad != 0), gram_dtype=gram_dtype)

    per_row = pl.pallas_call(
        kernel,
        out_shape=jax.ShapeDtypeStruct((n_pad, 1), jnp.float32),
        grid_spec=pltpu.PrefetchScalarGridSpec(
            num_scalar_prefetch=0,
            grid=grid,
            in_specs=[
                pl.BlockSpec((tile, c), lambda i, k: (i, 0)),   # x rows (resident)
                pl.BlockSpec((tile, c), lambda i, k: (k, 0)),   # x cols (streamed)
                pl.BlockSpec((tile, 1), lambda i, k: (i, 0)),   # |x|^2 rows
                pl.BlockSpec((1, tile), lambda i, k: (0, k)),   # |x|^2 cols
                pl.BlockSpec((tile, 1), lambda i, k: (i, 0)),   # labels rows
                pl.BlockSpec((1, tile), lambda i, k: (0, k)),   # labels cols
            ],
            out_specs=pl.BlockSpec((tile, 1), lambda i, k: (i, 0)),
            scratch_shapes=[pltpu.VMEM((tile, 1), jnp.float32),   # pos max d^2
                            pltpu.VMEM((tile, 1), jnp.float32)],  # neg min d^2
        ),
        compiler_params=pltpu.CompilerParams(
            dimension_semantics=("parallel", "arbitrary")),
    )(x_p, x_p, sq_col, sq_row, lab_col, lab_row)

    per_row = per_row[:n, 0]
    return jnp.mean(per_row) if size_average else jnp.sum(per_row)


def _reference(x, target, margin=0.0):
    """Plain-JAX re-implementation of the PyTorch forward (for verification)."""
    x = x.astype(jnp.float32)
    same = (target[:, None] == target[None, :]).astype(jnp.float32)
    sq = jnp.sum(x * x, axis=1, keepdims=True)
    d2 = sq + sq.T - 2.0 * (x @ x.T)
    d = jnp.sqrt(jnp.clip(d2, 1e-16))
    pos_max = jnp.max(d - 1.0e6 * (1.0 - same), axis=-1)
    neg_min = jnp.min(d + 1.0e6 * same, axis=-1)
    return jnp.mean(jnp.maximum(pos_max - neg_min + margin, 0.0))


if __name__ == "__main__":
    # Module forward: input (N, C), target (N,). No learned params.
    N, C = 8, 32
    key = jax.random.PRNGKey(0)
    kx, kt = jax.random.split(key)
    x = jax.random.normal(kx, (N, C), dtype=jnp.float32)
    target = jax.random.randint(kt, (N,), 0, 4, dtype=jnp.int32)

    ref = jax.block_until_ready(_reference(x, target, margin=0.0))

    # f32 Gram path (bit-faithful to the reference math).
    loss = jax.block_until_ready(triplet_semihard_loss(x, target, margin=0.0))
    assert jnp.allclose(loss, ref, atol=1e-4, rtol=1e-4), (loss, ref)

    # bf16 Gram operands (v6e/v7x MXU fast path) — f32 accumulation, looser tol.
    loss_bf16 = jax.block_until_ready(
        triplet_semihard_loss(x, target, margin=0.0, gram_dtype=jnp.bfloat16))
    assert jnp.allclose(loss_bf16, ref, atol=3e-2, rtol=3e-2), (loss_bf16, ref)

    print("KERNEL_OK")
</pallas_src>

<mosaic_0001>
module attributes {stable_mosaic.version = 11 : i64} {
  func.func @_triplet_kernel(%arg0: i32, %arg1: i32, %arg2: memref<128x32xf32, #tpu.memory_space<vmem>>, %arg3: memref<128x32xf32, #tpu.memory_space<vmem>>, %arg4: memref<128x1xf32, #tpu.memory_space<vmem>>, %arg5: memref<1x128xf32, #tpu.memory_space<vmem>>, %arg6: memref<128x1xi32, #tpu.memory_space<vmem>>, %arg7: memref<1x128xi32, #tpu.memory_space<vmem>>, %arg8: memref<128x1xf32, #tpu.memory_space<vmem>>, %arg9: memref<128x1xf32, #tpu.memory_space<vmem>>, %arg10: memref<128x1xf32, #tpu.memory_space<vmem>>) attributes {dimension_semantics = [#tpu.dimension_semantics<parallel>, #tpu.dimension_semantics<arbitrary>], iteration_bounds = array<i64: 1, 1>, scalar_prefetch = 0 : i64, scratch_operands = 2 : i64, tpu.core_type = #tpu.core_type<tc>, window_params = [{transform_indices = @transform_0, window_bounds = array<i64: 128, 32>}, {transform_indices = @transform_1, window_bounds = array<i64: 128, 32>}, {transform_indices = @transform_2, window_bounds = array<i64: 128, 1>}, {transform_indices = @transform_3, window_bounds = array<i64: 1, 128>}, {transform_indices = @transform_4, window_bounds = array<i64: 128, 1>}, {transform_indices = @transform_5, window_bounds = array<i64: 1, 128>}, {transform_indices = @transform_6, window_bounds = array<i64: 128, 1>}]} {
    %c0_i32 = arith.constant 0 : i32
    %0 = arith.cmpi eq, %arg1, %c0_i32 : i32
    %1 = arith.extui %0 : i1 to i32
    %c0_i32_0 = arith.constant 0 : i32
    %2 = arith.cmpi ne, %1, %c0_i32_0 : i32
    scf.if %2 {
      %cst_28 = arith.constant 0xFF800000 : f32
      %47 = vector.broadcast %cst_28 : f32 to vector<128x1xf32>
      %c0_29 = arith.constant 0 : index
      %c0_30 = arith.constant 0 : index
      %48 = vector.load %arg9[%c0_29, %c0_30] : memref<128x1xf32, #tpu.memory_space<vmem>>, vector<128x1xf32>
      tpu.vector_store %arg9[%c0_29, %c0_30], %47 {strides = array<i32>} : memref<128x1xf32, #tpu.memory_space<vmem>>, vector<128x1xf32>,
      %cst_31 = arith.constant 0x7F800000 : f32
      %49 = vector.broadcast %cst_31 : f32 to vector<128x1xf32>
      %c0_32 = arith.constant 0 : index
      %c0_33 = arith.constant 0 : index
      %50 = vector.load %arg10[%c0_32, %c0_33] : memref<128x1xf32, #tpu.memory_space<vmem>>, vector<128x1xf32>
      tpu.vector_store %arg10[%c0_32, %c0_33], %49 {strides = array<i32>} : memref<128x1xf32, #tpu.memory_space<vmem>>, vector<128x1xf32>,
    } else {
    }
    %c0 = arith.constant 0 : index
    %c0_1 = arith.constant 0 : index
    %3 = vector.load %arg2[%c0, %c0_1] : memref<128x32xf32, #tpu.memory_space<vmem>>, vector<128x32xf32>
    %c0_2 = arith.constant 0 : index
    %c0_3 = arith.constant 0 : index
    %4 = vector.load %arg3[%c0_2, %c0_3] : memref<128x32xf32, #tpu.memory_space<vmem>>, vector<128x32xf32>
    %cst = arith.constant dense<0.000000e+00> : vector<128x128xf32>
    %5 = tpu.matmul %3, %4, %cst {dimension_numbers = #tpu.dot_dimension_numbers<[1], [1], [0], [0], [0, 0, 1, 0], [], []>} : vector<128x32xf32>, vector<128x32xf32>, vector<128x128xf32> -> vector<128x128xf32>
    %c0_4 = arith.constant 0 : index
    %c0_5 = arith.constant 0 : index
    %6 = vector.load %arg4[%c0_4, %c0_5] : memref<128x1xf32, #tpu.memory_space<vmem>>, vector<128x1xf32>
    %c0_6 = arith.constant 0 : index
    %c0_7 = arith.constant 0 : index
    %7 = vector.load %arg5[%c0_6, %c0_7] : memref<1x128xf32, #tpu.memory_space<vmem>>, vector<1x128xf32>
    %8 = vector.broadcast %6 : vector<128x1xf32> to vector<128x128xf32>
    %9 = vector.broadcast %7 : vector<1x128xf32> to vector<128x128xf32>
    %10 = arith.addf %8, %9 : vector<128x128xf32>
    %cst_8 = arith.constant 2.000000e+00 : f32
    %11 = vector.broadcast %cst_8 : f32 to vector<128x128xf32>
    %12 = arith.mulf %11, %5 : vector<128x128xf32>
    %13 = arith.subf %10, %12 : vector<128x128xf32>
    %c0_9 = arith.constant 0 : index
    %c0_10 = arith.constant 0 : index
    %14 = vector.load %arg6[%c0_9, %c0_10] : memref<128x1xi32, #tpu.memory_space<vmem>>, vector<128x1xi32>
    %c0_11 = arith.constant 0 : index
    %c0_12 = arith.constant 0 : index
    %15 = vector.load %arg7[%c0_11, %c0_12] : memref<1x128xi32, #tpu.memory_space<vmem>>, vector<1x128xi32>
    %16 = vector.broadcast %14 : vector<128x1xi32> to vector<128x128xi32>
    %17 = vector.broadcast %15 : vector<1x128xi32> to vector<128x128xi32>
    %18 = arith.cmpi eq, %16, %17 : vector<128x128xi32>
    %cst_13 = arith.constant dense<true> : vector<128x128xi1>
    %19 = arith.xori %18, %cst_13 : vector<128x128xi1>
    %c128_i32 = arith.constant 128 : i32
    %20 = arith.muli %arg1, %c128_i32 : i32
    %21 = tpu.iota {dimensions = array<i32: 1>} : vector<1x128xi32>
    %22 = vector.broadcast %20 : i32 to vector<1x128xi32>
    %23 = arith.addi %22, %21 : vector<1x128xi32>
    %c8_i32 = arith.constant 8 : i32
    %24 = vector.broadcast %c8_i32 : i32 to vector<1x128xi32>
    %25 = arith.cmpi slt, %23, %24 : vector<1x128xi32>
    %26 = vector.broadcast %25 : vector<1x128xi1> to vector<128x128xi1>
    %27 = arith.andi %18, %26 : vector<128x128xi1>
    %28 = vector.broadcast %25 : vector<1x128xi1> to vector<128x128xi1>
    %29 = arith.andi %19, %28 : vector<128x128xi1>
    %cst_14 = arith.constant 0xFF800000 : f32
    %30 = vector.broadcast %cst_14 : f32 to vector<128x128xf32>
    %31 = arith.select %27, %13, %30 : vector<128x128xi1>, vector<128x128xf32>
    %cst_15 = arith.constant 0x7F800000 : f32
    %32 = vector.broadcast %cst_15 : f32 to vector<128x128xf32>
    %33 = arith.select %29, %13, %32 : vector<128x128xi1>, vector<128x128xf32>
    %c0_16 = arith.constant 0 : index
    %c0_17 = arith.constant 0 : index
    %34 = vector.load %arg9[%c0_16, %c0_17] : memref<128x1xf32, #tpu.memory_space<vmem>>, vector<128x1xf32>
    %cst_18 = arith.constant dense<0xFF800000> : vector<128xf32>
    %35 = vector.multi_reduction <maximumf>, %31, %cst_18 [1] : vector<128x128xf32> to vector<128xf32>
    %36 = vector.shape_cast %35 : vector<128xf32> to vector<128x1xf32>
    %37 = arith.maximumf %34, %36 : vector<128x1xf32>
    %c0_19 = arith.constant 0 : index
    %c0_20 = arith.constant 0 : index
    %38 = vector.load %arg9[%c0_19, %c0_20] : memref<128x1xf32, #tpu.memory_space<vmem>>, vector<128x1xf32>
    tpu.vector_store %arg9[%c0_19, %c0_20], %37 {strides = array<i32>} : memref<128x1xf32, #tpu.memory_space<vmem>>, vector<128x1xf32>,
    %c0_21 = arith.constant 0 : index
    %c0_22 = arith.constant 0 : index
    %39 = vector.load %arg10[%c0_21, %c0_22] : memref<128x1xf32, #tpu.memory_space<vmem>>, vector<128x1xf32>
    %cst_23 = arith.constant dense<0x7F800000> : vector<128xf32>
    %40 = vector.multi_reduction <minimumf>, %33, %cst_23 [1] : vector<128x128xf32> to vector<128xf32>
    %41 = vector.shape_cast %40 : vector<128xf32> to vector<128x1xf32>
    %42 = arith.minimumf %39, %41 : vector<128x1xf32>
    %c0_24 = arith.constant 0 : index
    %c0_25 = arith.constant 0 : index
    %43 = vector.load %arg10[%c0_24, %c0_25] : memref<128x1xf32, #tpu.memory_space<vmem>>, vector<128x1xf32>
    tpu.vector_store %arg10[%c0_24, %c0_25], %42 {strides = array<i32>} : memref<128x1xf32, #tpu.memory_space<vmem>>, vector<128x1xf32>,
    %c0_i32_26 = arith.constant 0 : i32
    %44 = arith.cmpi eq, %arg1, %c0_i32_26 : i32
    %45 = arith.extui %44 : i1 to i32
    %c0_i32_27 = arith.constant 0 : i32
    %46 = arith.cmpi ne, %45, %c0_i32_27 : i32
    scf.if %46 {
      %c0_28 = arith.constant 0 : index
      %c0_29 = arith.constant 0 : index
      %47 = vector.load %arg9[%c0_28, %c0_29] : memref<128x1xf32, #tpu.memory_space<vmem>>, vector<128x1xf32>
      %cst_30 = arith.constant 1.000000e-16 : f32
      %48 = vector.broadcast %cst_30 : f32 to vector<128x1xf32>
      %49 = arith.maximumf %47, %48 : vector<128x1xf32>
      %50 = math.sqrt %49 : vector<128x1xf32>
      %c0_31 = arith.constant 0 : index
      %c0_32 = arith.constant 0 : index
      %51 = vector.load %arg10[%c0_31, %c0_32] : memref<128x1xf32, #tpu.memory_space<vmem>>, vector<128x1xf32>
      %cst_33 = arith.constant 1.000000e-16 : f32
      %52 = vector.broadcast %cst_33 : f32 to vector<128x1xf32>
      %53 = arith.maximumf %51, %52 : vector<128x1xf32>
      %54 = math.sqrt %53 : vector<128x1xf32>
      %55 = arith.subf %50, %54 : vector<128x1xf32>
      %cst_34 = arith.constant 0.000000e+00 : f32
      %56 = vector.broadcast %cst_34 : f32 to vector<128x1xf32>
      %57 = arith.addf %55, %56 : vector<128x1xf32>
      %cst_35 = arith.constant 0.000000e+00 : f32
      %58 = vector.broadcast %cst_35 : f32 to vector<128x1xf32>
      %59 = arith.maximumf %57, %58 : vector<128x1xf32>
      %c0_36 = arith.constant 0 : index
      %c0_37 = arith.constant 0 : index
      %60 = vector.load %arg8[%c0_36, %c0_37] : memref<128x1xf32, #tpu.memory_space<vmem>>, vector<128x1xf32>
      tpu.vector_store %arg8[%c0_36, %c0_37], %59 {strides = array<i32>} : memref<128x1xf32, #tpu.memory_space<vmem>>, vector<128x1xf32>,
    } else {
    }
    return
  }
  func.func @transform_0(%arg0: i32, %arg1: i32) -> (i32, i32) {
    %c0_i32 = arith.constant 0 : i32
    %c0_i32_0 = arith.constant 0 : i32
    return %arg0, %c0_i32 : i32, i32
  }
  func.func @transform_1(%arg0: i32, %arg1: i32) -> (i32, i32) {
    %c0_i32 = arith.constant 0 : i32
    %c0_i32_0 = arith.constant 0 : i32
    return %arg1, %c0_i32 : i32, i32
  }
  func.func @transform_2(%arg0: i32, %arg1: i32) -> (i32, i32) {
    %c0_i32 = arith.constant 0 : i32
    %c0_i32_0 = arith.constant 0 : i32
    return %arg0, %c0_i32 : i32, i32
  }
  func.func @transform_3(%arg0: i32, %arg1: i32) -> (i32, i32) {
    %c0_i32 = arith.constant 0 : i32
    %c0_i32_0 = arith.constant 0 : i32
    return %c0_i32, %arg1 : i32, i32
  }
  func.func @transform_4(%arg0: i32, %arg1: i32) -> (i32, i32) {
    %c0_i32 = arith.constant 0 : i32
    %c0_i32_0 = arith.constant 0 : i32
    return %arg0, %c0_i32 : i32, i32
  }
  func.func @transform_5(%arg0: i32, %arg1: i32) -> (i32, i32) {
    %c0_i32 = arith.constant 0 : i32
    %c0_i32_0 = arith.constant 0 : i32
    return %c0_i32, %arg1 : i32, i32
  }
  func.func @transform_6(%arg0: i32, %arg1: i32) -> (i32, i32) {
    %c0_i32 = arith.constant 0 : i32
    %c0_i32_0 = arith.constant 0 : i32
    return %arg0, %c0_i32 : i32, i32
  }
}

</mosaic_0001>

<bundles_post_ra>
// kernel: tpu_custom_call.1
= control target key start
LH: loop header
LB: loop body
LE: loop exit
PB: predicated region body
PF: predicated region fallthrough
CT: control target
= control target key end

     0   :  { %v1405_v0 = vmov 0   ;;  %vm92_vm0 = vcmask 261120   ;;  %vm1406_vm2 = vmmov 1   ;;  %s2639_s2 = inlined_call_operand.vmem [shape: f32[128,1], index: 2, kind: input, shape index: {}]   ;;  %s2640_s1 = inlined_call_operand.vmem [shape: f32[128,32], index: 1, kind: input, shape index: {}]   ;;  %s2641_s3 = inlined_call_operand.vmem [shape: f32[1,128], index: 3, kind: input, shape index: {}]   ;;  %s2642_s5 = inlined_call_operand.vmem [shape: s32[1,128], index: 5, kind: input, shape index: {}]   ;;  %s2643_s4 = inlined_call_operand.vmem [shape: s32[128,1], index: 4, kind: input, shape index: {}]   ;;  %s2644_s0 = inlined_call_operand.vmem [shape: f32[128,32], index: 0, kind: input, shape index: {}]   ;;  %s2645_s6 = inlined_call_operand.vmem [shape: f32[128,1], index: 6, kind: output, shape index: {}]  }
   0x1   :  { %1338 = vset.pattern.permute.xlu2 %v1405_v0  ;;  %1337 = vset.pattern.permute.xlu1 %v1405_v0  ;;  %v258_v1 = vld [vmem:[%s2639_s2 + $0x20] sm:$0xff]  ;;  %v256_v2 = vld [vmem:[%s2639_s2 + $0x10] sm:$0xff]  ;;  %v91_v4 = vld [vmem:[%s2640_s1 + $0x78] sm:$0xff] }
   0x2   :  { %v254_v3 = vld [vmem:[%s2639_s2] sm:$0xff]  ;;  %1336 = vset.pattern.permute.xlu0 %v1405_v0  ;;  %293 = vperm.xlu2 %1338, %v258_v1   ;;  %v90_v5 = vld [vmem:[%s2640_s1 + $0x70] sm:$0xff]  ;;  %v259_v6 = vld [vmem:[%s2639_s2 + $0x28] sm:$0xff] }
   0x3   :  { %283 = vperm.xlu1 %1337, %v256_v2   ;;  %273 = vperm.xlu0 %1336, %v254_v3   ;;  %v257_v7 = vld [vmem:[%s2639_s2 + $0x18] sm:$0xff]  ;;  %v255_v8 = vld [vmem:[%s2639_s2 + $0x8] sm:$0xff]  ;;  %v88_v10 = vld [vmem:[%s2640_s1 + $0x60] sm:$0xff] }
   0x4   :  { %1252 = vmatpush.xpose.msk.msra.mxu0 %vm92_vm0, %v91_v4  ;;  %1284 = vmatpush.xpose.msk.msra.mxu1 %vm92_vm0, %v91_v4  ;;  %v89_v9 = vld [vmem:[%s2640_s1 + $0x68] sm:$0xff]  ;;  %v262_v11 = vld [vmem:[%s2639_s2 + $0x40] sm:$0xff]  ;;  %v261_v12 = vld [vmem:[%s2639_s2 + $0x38] sm:$0xff] }
   0x5   :  { %1285 = vmatpush.xpose.msk.msra.mxu2 %vm92_vm0, %v91_v4  ;;  %1286 = vmatpush.xpose.msk.msra.mxu3 %vm92_vm0, %v91_v4  ;;  %v260_v13 = vld [vmem:[%s2639_s2 + $0x30] sm:$0xff]  ;;  %v87_v14 = vld [vmem:[%s2640_s1 + $0x58] sm:$0xff]  ;;  %v263_v18 = vld [vmem:[%s2639_s2 + $0x48] sm:$0xff] }
   0x6   :  { %v86_v15 = vld [vmem:[%s2640_s1 + $0x50] sm:$0xff]  ;;  %v265_v16 = vld [vmem:[%s2639_s2 + $0x58] sm:$0xff]  ;;  %v85_v19 = vld [vmem:[%s2640_s1 + $0x48] sm:$0xff] }
   0x7   :  { %v264_v17 = vld [vmem:[%s2639_s2 + $0x50] sm:$0xff]  ;;  %v84_v20 = vld [vmem:[%s2640_s1 + $0x40] sm:$0xff]  ;;  %v267_v22 = vld [vmem:[%s2639_s2 + $0x68] sm:$0xff] }
   0x8   :  { %1253 = vmatpush.xpose.msk.msra.mxu0 %vm92_vm0, %v90_v5  ;;  %1287 = vmatpush.xpose.msk.msra.mxu1 %vm92_vm0, %v90_v5  ;;  %v268_v21 = vld [vmem:[%s2639_s2 + $0x70] sm:$0xff]  ;;  %v266_v23 = vld [vmem:[%s2639_s2 + $0x60] sm:$0xff]  ;;  %v83_v24 = vld [vmem:[%s2640_s1 + $0x38] sm:$0xff] }
   0x9   :  { %1288 = vmatpush.xpose.msk.msra.mxu2 %vm92_vm0, %v90_v5  ;;  %1289 = vmatpush.xpose.msk.msra.mxu3 %vm92_vm0, %v90_v5  ;;  %v82_v25 = vld [vmem:[%s2640_s1 + $0x30] sm:$0xff]  ;;  %v403_v26 = vld [vmem:[%s2643_s4 + $0x8] sm:$0xff]  ;;  %v402_v27 = vld [vmem:[%s2643_s4] sm:$0xff] }
   0xa   :  { %298 = vperm.xlu2 %1338, %v259_v6   ;;  %v269_v28 = vld [vmem:[%s2639_s2 + $0x78] sm:$0xff]  ;;  %v81_v29 = vld [vmem:[%s2640_s1 + $0x28] sm:$0xff]  ;;  %v80_v30 = vld [vmem:[%s2640_s1 + $0x20] sm:$0xff] }
   0xb   :  { %288 = vperm.xlu1 %1337, %v257_v7   ;;  %278 = vperm.xlu0 %1336, %v255_v8   ;;  %v406_v31 = vld [vmem:[%s2643_s4 + $0x20] sm:$0xff]  ;;  %v405_v32 = vld [vmem:[%s2643_s4 + $0x18] sm:$0xff]  ;;  %v404_v33 = vld [vmem:[%s2643_s4 + $0x10] sm:$0xff] }
   0xc   :  { %1254 = vmatpush.xpose.msk.msra.mxu0 %vm92_vm0, %v89_v9  ;;  %1290 = vmatpush.xpose.msk.msra.mxu1 %vm92_vm0, %v89_v9  ;;  %v79_v34 = vld [vmem:[%s2640_s1 + $0x18] sm:$0xff]  ;;  %v78_v35 = vld [vmem:[%s2640_s1 + $0x10] sm:$0xff]  ;;  %v407_v38 = vld [vmem:[%s2643_s4 + $0x28] sm:$0xff] }
   0xd   :  { %1291 = vmatpush.xpose.msk.msra.mxu2 %vm92_vm0, %v89_v9  ;;  %1292 = vmatpush.xpose.msk.msra.mxu3 %vm92_vm0, %v89_v9  ;;  %v409_v36 = vld [vmem:[%s2643_s4 + $0x38] sm:$0xff]  ;;  %v408_v37 = vld [vmem:[%s2643_s4 + $0x30] sm:$0xff]  ;;  %v77_v39 = vld [vmem:[%s2640_s1 + $0x8] sm:$0xff] }
   0xe   :  { %v76_v40 = vld [vmem:[%s2640_s1] sm:$0xff]  ;;  %v412_v41 = vld [vmem:[%s2643_s4 + $0x50] sm:$0xff]  ;;  %v411_v46 = vld [vmem:[%s2643_s4 + $0x48] sm:$0xff] }
   0xf   :  { %v60_v42 = vld [vmem:[%s2644_s0] sm:$0xff]  ;;  %v415_v48 = vld [vmem:[%s2643_s4 + $0x68] sm:$0xff]  ;;  %v413_v54 = vld [vmem:[%s2643_s4 + $0x58] sm:$0xff] }
  0x10   :  { %1255 = vmatpush.xpose.msk.msra.mxu0 %vm92_vm0, %v88_v10  ;;  %1293 = vmatpush.xpose.msk.msra.mxu1 %vm92_vm0, %v88_v10  ;;  %v64_v43 = vld [vmem:[%s2644_s0 + $0x20] sm:$0xff]  ;;  %v61_v49 = vld [vmem:[%s2644_s0 + $0x8] sm:$0xff]  ;;  %v62_v55 = vld [vmem:[%s2644_s0 + $0x10] sm:$0xff] }
  0x11   :  { %1294 = vmatpush.xpose.msk.msra.mxu2 %vm92_vm0, %v88_v10  ;;  %1295 = vmatpush.xpose.msk.msra.mxu3 %vm92_vm0, %v88_v10  ;;  %v68_v44 = vld [vmem:[%s2644_s0 + $0x40] sm:$0xff]  ;;  %v65_v50 = vld [vmem:[%s2644_s0 + $0x28] sm:$0xff]  ;;  %v66_v56 = vld [vmem:[%s2644_s0 + $0x30] sm:$0xff] }
  0x12   :  { %313 = vperm.xlu2 %1338, %v262_v11   ;;  %v72_v45 = vld [vmem:[%s2644_s0 + $0x60] sm:$0xff]  ;;  %v69_v51 = vld [vmem:[%s2644_s0 + $0x48] sm:$0xff]  ;;  %v70_v57 = vld [vmem:[%s2644_s0 + $0x50] sm:$0xff] }
  0x13   :  { %308 = vperm.xlu1 %1337, %v261_v12   ;;  %303 = vperm.xlu0 %1336, %v260_v13   ;;  %v410_v47 = vld [vmem:[%s2643_s4 + $0x40] sm:$0xff]  ;;  %v73_v52 = vld [vmem:[%s2644_s0 + $0x68] sm:$0xff]  ;;  %v74_v58 = vld [vmem:[%s2644_s0 + $0x70] sm:$0xff] }
  0x14   :  { %1256 = vmatpush.xpose.msk.msra.mxu0 %vm92_vm0, %v87_v14  ;;  %1296 = vmatpush.xpose.msk.msra.mxu1 %vm92_vm0, %v87_v14  ;;  %v414_v53 = vld [vmem:[%s2643_s4 + $0x60] sm:$0xff]  ;;  %v417_v59 = vld [vmem:[%s2643_s4 + $0x78] sm:$0xff]  ;;  %v416_v60 = vld [vmem:[%s2643_s4 + $0x70] sm:$0xff] }
  0x15   :  { %1297 = vmatpush.xpose.msk.msra.mxu2 %vm92_vm0, %v87_v14  ;;  %1298 = vmatpush.xpose.msk.msra.mxu3 %vm92_vm0, %v87_v14  ;;  %v63_v61 = vld [vmem:[%s2644_s0 + $0x18] sm:$0xff] }
  0x16   :  { %v67_v62 = vld [vmem:[%s2644_s0 + $0x38] sm:$0xff] }
  0x17   :  { %v71_v63 = vld [vmem:[%s2644_s0 + $0x58] sm:$0xff] }
  0x18   :  { %1257 = vmatpush.xpose.msk.msra.mxu0 %vm92_vm0, %v86_v15  ;;  %1299 = vmatpush.xpose.msk.msra.mxu1 %vm92_vm0, %v86_v15  ;;  %v75_v0 = vld [vmem:[%s2644_s0 + $0x78] sm:$0xff] }
  0x19   :  { %1300 = vmatpush.xpose.msk.msra.mxu2 %vm92_vm0, %v86_v15  ;;  %1301 = vmatpush.xpose.msk.msra.mxu3 %vm92_vm0, %v86_v15 }
  0x1a   :  { %328 = vperm.xlu2 %1338, %v265_v16  }
  0x1b   :  { %323 = vperm.xlu1 %1337, %v264_v17   ;;  %318 = vperm.xlu0 %1336, %v263_v18  }
  0x1c   :  { %1258 = vmatpush.xpose.msk.msra.mxu0 %vm92_vm0, %v85_v19  ;;  %1302 = vmatpush.xpose.msk.msra.mxu1 %vm92_vm0, %v85_v19 }
  0x1d   :  { %1303 = vmatpush.xpose.msk.msra.mxu2 %vm92_vm0, %v85_v19  ;;  %1304 = vmatpush.xpose.msk.msra.mxu3 %vm92_vm0, %v85_v19 }
  0x20   :  { %1259 = vmatpush.xpose.msk.msra.mxu0 %vm92_vm0, %v84_v20  ;;  %1305 = vmatpush.xpose.msk.msra.mxu1 %vm92_vm0, %v84_v20 }
  0x21   :  { %1306 = vmatpush.xpose.msk.msra.mxu2 %vm92_vm0, %v84_v20  ;;  %1307 = vmatpush.xpose.msk.msra.mxu3 %vm92_vm0, %v84_v20 }
  0x22   :  { %343 = vperm.xlu2 %1338, %v268_v21  }
  0x23   :  { %338 = vperm.xlu1 %1337, %v267_v22   ;;  %333 = vperm.xlu0 %1336, %v266_v23   ;;  %v501_v22 = vlaneseq  ;;  %v1751_v23 = vld [vmem:[%s2642_s5] ss:$0 sm:$0xff] }
  0x24   :  { %1260 = vmatpush.xpose.msk.msra.mxu0 %vm92_vm0, %v83_v24  ;;  %1308 = vmatpush.xpose.msk.msra.mxu1 %vm92_vm0, %v83_v24 }
  0x25   :  { %1309 = vmatpush.xpose.msk.msra.mxu2 %vm92_vm0, %v83_v24  ;;  %1310 = vmatpush.xpose.msk.msra.mxu3 %vm92_vm0, %v83_v24 }
  0x28   :  { %1261 = vmatpush.xpose.msk.msra.mxu0 %vm92_vm0, %v82_v25  ;;  %1311 = vmatpush.xpose.msk.msra.mxu1 %vm92_vm0, %v82_v25 }
  0x29   :  { %1312 = vmatpush.xpose.msk.msra.mxu2 %vm92_vm0, %v82_v25  ;;  %1313 = vmatpush.xpose.msk.msra.mxu3 %vm92_vm0, %v82_v25 }
  0x2a   :  { %423 = vperm.xlu2 %1338, %v403_v26  }
  0x2b   :  { %420 = vperm.xlu1 %1337, %v402_v27   ;;  %348 = vperm.xlu0 %1336, %v269_v28   ;;  %v1757_v27 = vand.u32 127, %v501_v22  ;;  %v1763_v28 = vld [vmem:[%s2641_s3] ss:$0 sm:$0xff] }
  0x2c   :  { %1262 = vmatpush.xpose.msk.msra.mxu0 %vm92_vm0, %v81_v29  ;;  %1314 = vmatpush.xpose.msk.msra.mxu1 %vm92_vm0, %v81_v29 }
  0x2d   :  { %1315 = vmatpush.xpose.msk.msra.mxu2 %vm92_vm0, %v81_v29  ;;  %1316 = vmatpush.xpose.msk.msra.mxu3 %vm92_vm0, %v81_v29  ;;  %vm505_vm4 = vcmp.lt.s32.totalorder %v1757_v27, 8 }
  0x30   :  { %1263 = vmatpush.xpose.msk.msra.mxu0 %vm92_vm0, %v80_v30  ;;  %1317 = vmatpush.xpose.msk.msra.mxu1 %vm92_vm0, %v80_v30 }
  0x31   :  { %1318 = vmatpush.xpose.msk.msra.mxu2 %vm92_vm0, %v80_v30  ;;  %1319 = vmatpush.xpose.msk.msra.mxu3 %vm92_vm0, %v80_v30 }
  0x32   :  { %432 = vperm.xlu2 %1338, %v406_v31  }
  0x33   :  { %429 = vperm.xlu1 %1337, %v405_v32   ;;  %426 = vperm.xlu0 %1336, %v404_v33  }
  0x34   :  { %1264 = vmatpush.xpose.msk.msra.mxu0 %vm92_vm0, %v79_v34  ;;  %1320 = vmatpush.xpose.msk.msra.mxu1 %vm92_vm0, %v79_v34 }
  0x35   :  { %1321 = vmatpush.xpose.msk.msra.mxu2 %vm92_vm0, %v79_v34  ;;  %1322 = vmatpush.xpose.msk.msra.mxu3 %vm92_vm0, %v79_v34 }
  0x38   :  { %1265 = vmatpush.xpose.msk.msra.mxu0 %vm92_vm0, %v78_v35  ;;  %1323 = vmatpush.xpose.msk.msra.mxu1 %vm92_vm0, %v78_v35 }
  0x39   :  { %1324 = vmatpush.xpose.msk.msra.mxu2 %vm92_vm0, %v78_v35  ;;  %1325 = vmatpush.xpose.msk.msra.mxu3 %vm92_vm0, %v78_v35 }
  0x3a   :  { %441 = vperm.xlu2 %1338, %v409_v36  }
  0x3b   :  { %438 = vperm.xlu1 %1337, %v408_v37   ;;  %435 = vperm.xlu0 %1336, %v407_v38  }
  0x3c   :  { %1266 = vmatpush.xpose.msk.msra.mxu0 %vm92_vm0, %v77_v39  ;;  %1326 = vmatpush.xpose.msk.msra.mxu1 %vm92_vm0, %v77_v39 }
  0x3d   :  { %1327 = vmatpush.xpose.msk.msra.mxu2 %vm92_vm0, %v77_v39  ;;  %1328 = vmatpush.xpose.msk.msra.mxu3 %vm92_vm0, %v77_v39 }
  0x40   :  { %1267 = vmatpush.xpose.msk.msra.mxu0 %vm92_vm0, %v76_v40  ;;  %1329 = vmatpush.xpose.msk.msra.mxu1 %vm92_vm0, %v76_v40 }
  0x41   :  { %1330 = vmatpush.xpose.msk.msra.mxu2 %vm92_vm0, %v76_v40  ;;  %1331 = vmatpush.xpose.msk.msra.mxu3 %vm92_vm0, %v76_v40 }
  0x42   :  { %450 = vperm.xlu2 %1338, %v412_v41  }
  0x43   :  { %1268 = vmatmul.msk.f32.vlgmr.msra.gmra.mxu0 %vm92_vm0, %v60_v42  ;;  %1272 = vmatmul.msk.f32.vlgmr.msra.gmra.mxu1 %vm92_vm0, %v64_v43 }
  0x44   :  { %1276 = vmatmul.msk.f32.vlgmr.msra.gmra.mxu2 %vm92_vm0, %v68_v44  ;;  %1280 = vmatmul.msk.f32.vlgmr.msra.gmra.mxu3 %vm92_vm0, %v72_v45 }
  0x45   :  { %447 = vperm.xlu1 %1337, %v411_v46   ;;  %444 = vperm.xlu0 %1336, %v410_v47  }
  0x4a   :  { %459 = vperm.xlu2 %1338, %v415_v48  }
  0x4b   :  { %1269 = vmatmul.msk.f32.gmra.mxu0 %vm92_vm0, %v61_v49  ;;  %1273 = vmatmul.msk.f32.gmra.mxu1 %vm92_vm0, %v65_v50 }
  0x4c   :  { %1277 = vmatmul.msk.f32.gmra.mxu2 %vm92_vm0, %v69_v51  ;;  %1281 = vmatmul.msk.f32.gmra.mxu3 %vm92_vm0, %v73_v52 }
  0x4d   :  { %456 = vperm.xlu1 %1337, %v414_v53   ;;  %453 = vperm.xlu0 %1336, %v413_v54  }
  0x53   :  { %1270 = vmatmul.msk.f32.gmra.mxu0 %vm92_vm0, %v62_v55  ;;  %1274 = vmatmul.msk.f32.gmra.mxu1 %vm92_vm0, %v66_v56 }
  0x54   :  { %1278 = vmatmul.msk.f32.gmra.mxu2 %vm92_vm0, %v70_v57  ;;  %1282 = vmatmul.msk.f32.gmra.mxu3 %vm92_vm0, %v74_v58 }
  0x55   :  { %465 = vperm.xlu1 %1337, %v417_v59   ;;  %462 = vperm.xlu0 %1336, %v416_v60  }
  0x5b   :  { %1271 = vmatmul.msk.f32.gmra.mxu0 %vm92_vm0, %v63_v61  ;;  %1275 = vmatmul.msk.f32.gmra.mxu1 %vm92_vm0, %v67_v62 }
  0x5c   :  { %1279 = vmatmul.msk.f32.gmra.mxu2 %vm92_vm0, %v71_v63  ;;  %1283 = vmatmul.msk.f32.gmra.mxu3 %vm92_vm0, %v75_v0  ;;  %v294_v5 = vpop.permute.xlu2 %293 }
  0x5d   :  { %v358_v29 = vadd.f32 %v1763_v28, %v294_v5 }
  0x64   :  { %v1726_v8 = vpop.permute.xlu2 %298 }
  0x65   :  { %v359_v0 = vadd.f32 %v1763_v28, %v1726_v8 }
  0x6c   :  { %v314_v11 = vpop.permute.xlu2 %313 }
  0x6d   :  { %v362_v41 = vadd.f32 %v1763_v28, %v314_v11 }
  0x74   :  { %v1734_v14 = vpop.permute.xlu2 %328 }
  0x75   :  { %v1716_v1 = vpop.permute.xlu1 %283  ;;  %v274_v2 = vpop.permute.xlu0 %273 }
  0x76   :  { %v354_v32 = vadd.f32 %v1763_v28, %v274_v2 }
  0x7c   :  { %v1738_v17 = vpop.permute.xlu2 %343 }
  0x7d   :  { %v1718_v3 = vpop.permute.xlu1 %288  ;;  %v1720_v4 = vpop.permute.xlu0 %278 }
  0x7e   :  { %v355_v55 = vadd.f32 %v1763_v28, %v1720_v4 }
  0x84   :  { %v1744_v20 = vpop.permute.xlu2 %423 }
  0x85   :  { %v1722_v6 = vpop.permute.xlu1 %308  ;;  %v1724_v7 = vpop.permute.xlu0 %303  ;;  %vm469_vm13 = vcmp.eq.s32.totalorder %v1744_v20, %v1751_v23 }
  0x8c   :  { %v433_v25 = vpop.permute.xlu2 %432 }
  0x8d   :  { %v1728_v9 = vpop.permute.xlu1 %323  ;;  %v1730_v10 = vpop.permute.xlu0 %318  ;;  %vm472_vm1 = vcmp.eq.s32.totalorder %v433_v25, %v1751_v23 }
  0x8e   :  { %vm488_vm3 = vmxor %vm472_vm1, %vm1406_vm2 }
  0x8f   :  { %vm528_vm6 = vmand %vm488_vm3, %vm505_vm4 }
  0x90   :  { %vm512_vm12 = vmand %vm472_vm1, %vm505_vm4 }
  0x91   :  { %vm509_vm1 = vmand %vm469_vm13, %vm505_vm4 }
  0x94   :  { %v1782_v48 = vpop.permute.xlu2 %441 }
  0x95   :  { %v1732_v12 = vpop.permute.xlu1 %338  ;;  %v334_v13 = vpop.permute.xlu0 %333 }
  0x96   :  { %v366_v44 = vadd.f32 %v1763_v28, %v334_v13  ;;  %v357_v13 = vadd.f32 %v1763_v28, %v1718_v3 }
  0x9c   :  { %v1815_v59 = vpop.permute.xlu2 %450 }
  0x9d   :  { %v421_v15 = vpop.permute.xlu1 %420  ;;  %v1736_v16 = vpop.permute.xlu0 %348 }
  0x9e   :  { %vm468_vm5 = vcmp.eq.s32.totalorder %v421_v15, %v1751_v23 }
  0x9f   :  { %vm508_vm7 = vmand %vm468_vm5, %vm505_vm4 }
  0xa0   :  { %vm484_vm15 = vmxor %vm468_vm5, %vm1406_vm2 }
  0xa1   :  { %vm524_vm5 = vmand %vm484_vm15, %vm505_vm4 }
  0xa5   :  { %v1740_v18 = vpop.permute.xlu1 %429  ;;  %v1742_v19 = vpop.permute.xlu0 %426 }
  0xa6   :  { %vm471_vm0 = vcmp.eq.s32.totalorder %v1740_v18, %v1751_v23 }
  0xad   :  { %v1746_v21 = vpop.permute.xlu1 %438  ;;  %v1753_v24 = vpop.permute.xlu0 %435 }
  0xb7   :  { %v1755_v26 = vpop.permute.xlu1 %447  ;;  %v445_v37 = vpop.permute.xlu0 %444 }
  0xb8   :  { %vm476_vm8 = vcmp.eq.s32.totalorder %v445_v37, %v1751_v23 }
  0xb9   :  { %vm516_vm10 = vmand %vm476_vm8, %vm505_vm4 }
  0xba   :  { %vm492_vm14 = vmxor %vm476_vm8, %vm1406_vm2 }
  0xbb   :  { %vm532_vm3 = vmand %vm492_vm14, %vm505_vm4 }
  0xbc   :  { %vm1832_vm8 = vmand %vm471_vm0, %vm505_vm4 }
  0xbf   :  { %v457_v40 = vpop.permute.xlu1 %456  ;;  %v1853_v22 = vpop.permute.xlu0 %453 }
  0xc0   :  { %v206_v30 = vpop.f32.mrf.mxu0  ;;  %v218_v31 = vpop.f32.mrf.mxu1  ;;  %vm480_vm9 = vcmp.eq.s32.totalorder %v457_v40, %v1751_v23 }
  0xc1   :  { %v370_v33 = vmul.f32 2.0, %v206_v30  ;;  %v374_v34 = vmul.f32 2.0, %v218_v31  ;;  %vm520_vm11 = vmand %vm480_vm9, %vm505_vm4 }
  0xc3   :  { %v390_v35 = vsub.f32 %v358_v29, %v374_v34  ;;  %v386_v36 = vsub.f32 %v354_v32, %v370_v33 }
  0xc5   :  { %v560_v38 = vsel %vm528_vm6, %v390_v35, inf  ;;  %v540_v39 = vsel %vm508_vm7, %v386_v36, -inf  ;;  %v544_v54 = vsel %vm512_vm12, %v390_v35, -inf  ;;  %vm473_vm6 = vcmp.eq.s32.totalorder %v1753_v24, %v1751_v23  ;;  %vm487_vm7 = vmxor %vm471_vm0, %vm1406_vm2  ;;  %v1872_v35 = vpop.permute.xlu2 %459 }
  0xc6   :  { %677 = vmin.xlane.f32.xlu0 %v560_v38  ;;  %588 = vmax.xlane.f32.xlu2 %v540_v39  ;;  %v556_v63 = vsel %vm524_vm5, %v386_v36, inf  ;;  %vm496_vm12 = vmxor %vm480_vm9, %vm1406_vm2  ;;  %v363_v24 = vadd.f32 %v1763_v28, %v1730_v10  ;;  %v367_v36 = vadd.f32 %v1763_v28, %v1732_v12 }
  0xc7   :  { %v230_v42 = vpop.f32.mrf.mxu2  ;;  %v242_v43 = vpop.f32.mrf.mxu3  ;;  %vm513_vm15 = vmand %vm473_vm6, %vm505_vm4 }
  0xc8   :  { %v378_v45 = vmul.f32 2.0, %v230_v42  ;;  %v382_v46 = vmul.f32 2.0, %v242_v43  ;;  %v209_v47 = vpop.f32.mrf.mxu0  ;;  %v221_v58 = vpop.f32.mrf.mxu1  ;;  %vm536_vm9 = vmand %vm496_vm12, %vm505_vm4  ;;  %v356_v43 = vadd.f32 %v1763_v28, %v1716_v1 }
  0xc9   :  { %v371_v51 = vmul.f32 2.0, %v209_v47  ;;  %v375_v60 = vmul.f32 2.0, %v221_v58  ;;  %vm485_vm0 = vmxor %vm469_vm13, %vm1406_vm2  ;;  %v361_v58 = vadd.f32 %v1763_v28, %v1722_v6 }
  0xca   :  { %v398_v49 = vsub.f32 %v366_v44, %v382_v46  ;;  %v394_v50 = vsub.f32 %v362_v41, %v378_v45  ;;  %v1898_v41 = vpop.permute.xlu0 %462  ;;  %v368_v44 = vadd.f32 %v1763_v28, %v1738_v17 }
  0xcb   :  { %v387_v57 = vsub.f32 %v355_v55, %v371_v51  ;;  %v391_v11 = vsub.f32 %v359_v0, %v375_v60 }
  0xcc   :  { %v552_v52 = vsel %vm520_vm11, %v398_v49, -inf  ;;  %v548_v53 = vsel %vm516_vm10, %v394_v50, -inf  ;;  %v564_v61 = vsel %vm532_vm3, %v394_v50, inf  ;;  %vm489_vm10 = vmxor %vm473_vm6, %vm1406_vm2  ;;  %v568_v32 = vsel %vm536_vm9, %v398_v49, inf }
  0xcd   :  { %612 = vmax.xlane.f32.xlu1 %v552_v52  ;;  %v541_v62 = vsel %vm509_vm1, %v387_v57, -inf  ;;  %vm1842_vm11 = vmand %vm487_vm7, %vm505_vm4  ;;  %v545_v30 = vsel %vm513_vm15, %v391_v11, -inf  ;;  %vm477_vm1 = vcmp.eq.s32.totalorder %v1755_v26, %v1751_v23  ;;  %vm481_vm3 = vcmp.eq.s32.totalorder %v1872_v35, %v1751_v23 }
  0xce   :  { %604 = vmax.xlane.f32.xlu0 %v548_v53  ;;  %596 = vmax.xlane.f32.xlu2 %v544_v54  ;;  %vm529_vm14 = vmand %vm489_vm10, %vm505_vm4  ;;  %vm470_vm7 = vcmp.eq.s32.totalorder %v1742_v19, %v1751_v23  ;;  %vm482_vm10 = vcmp.eq.s32.totalorder %v1898_v41, %v1751_v23  ;;  %vm478_vm15 = vcmp.eq.s32.totalorder %v1815_v59, %v1751_v23 }
  0xcf   :  { %v245_v4 = vpop.f32.mrf.mxu3  ;;  %v233_v15 = vpop.f32.mrf.mxu2  ;;  %v561_v29 = vsel %vm529_vm14, %v391_v11, inf  ;;  %vm525_vm6 = vmand %vm485_vm0, %vm505_vm4  ;;  %v360_v52 = vadd.f32 %v1763_v28, %v1724_v7  ;;  %v364_v53 = vadd.f32 %v1763_v28, %v1728_v9  ;;  %v365_v11 = vadd.f32 %v1763_v28, %v1734_v14 }
  0xd0   :  { %v212_v56 = vpop.f32.mrf.mxu0  ;;  %v379_v3 = vmul.f32 2.0, %v233_v15  ;;  %v383_v31 = vmul.f32 2.0, %v245_v4  ;;  %vm517_vm13 = vmand %vm477_vm1, %vm505_vm4  ;;  %v557_v40 = vsel %vm525_vm6, %v387_v57, inf  ;;  %v224_v45 = vpop.f32.mrf.mxu1  ;;  %v1407_v15 = vmov inf  }
  0xd1   :  { %v372_v12 = vmul.f32 2.0, %v212_v56  ;;  %vm521_vm5 = vmand %vm481_vm3, %vm505_vm4  ;;  %v376_v17 = vmul.f32 2.0, %v224_v45  ;;  %v466_v4 = vpop.permute.xlu1 %465 }
  0xd2   :  { %v395_v37 = vsub.f32 %v363_v24, %v379_v3  ;;  %v1884_v10 = vsub.f32 %v367_v36, %v383_v31  ;;  %vm493_vm12 = vmxor %vm477_vm1, %vm1406_vm2  ;;  %vm474_vm1 = vcmp.eq.s32.totalorder %v1746_v21, %v1751_v23  ;;  %v1408_v3 = vmov -inf  }
  0xd3   :  { %v388_v46 = vsub.f32 %v356_v43, %v372_v12  ;;  %vm510_vm14 = vmand %vm470_vm7, %vm505_vm4  ;;  %v392_v54 = vsub.f32 %v360_v52, %v376_v17 }
  0xd4   :  { %v549_v39 = vsel %vm517_vm13, %v395_v37, -inf  ;;  %v553_v42 = vsel %vm521_vm5, %v1884_v10, -inf  ;;  %vm522_vm9 = vmand %vm482_vm10, %vm505_vm4 }
  0xd5   :  { %685 = vmin.xlane.f32.xlu1 %v564_v61  ;;  %v542_v26 = vsel %vm510_vm14, %v388_v46, -inf  ;;  %vm533_vm0 = vmand %vm493_vm12, %vm505_vm4  ;;  %vm475_vm14 = vcmp.eq.s32.totalorder %v1782_v48, %v1751_v23 }
  0xd6   :  { %590 = vmax.xlane.f32.xlu0 %v541_v62  ;;  %669 = vmin.xlane.f32.xlu2 %v556_v63  ;;  %v565_v51 = vsel %vm533_vm0, %v395_v37, inf  ;;  %vm494_vm6 = vmxor %vm478_vm15, %vm1406_vm2 }
  0xd7   :  { %v248_v38 = vpop.f32.mrf.mxu3  ;;  %v236_v1 = vpop.f32.mrf.mxu2  ;;  %vm490_vm13 = vmxor %vm474_vm1, %vm1406_vm2 }
  0xd8   :  { %v215_v5 = vpop.f32.mrf.mxu0  ;;  %v384_v20 = vmul.f32 2.0, %v248_v38  ;;  %v380_v49 = vmul.f32 2.0, %v236_v1  ;;  %v227_v56 = vpop.f32.mrf.mxu1  ;;  %vm534_vm5 = vmand %vm494_vm6, %vm505_vm4 }
  0xd9   :  { %v373_v18 = vmul.f32 2.0, %v215_v5  ;;  %vm514_vm12 = vmand %vm474_vm1, %vm505_vm4  ;;  %v377_v7 = vmul.f32 2.0, %v227_v56 }
  0xda   :  { %v1909_v47 = vsub.f32 %v368_v44, %v384_v20  ;;  %v396_v55 = vsub.f32 %v364_v53, %v380_v49  ;;  %v546_v9 = vsel %vm514_vm12, %v392_v54, -inf  ;;  %vm491_vm0 = vmxor %vm475_vm14, %vm1406_vm2  ;;  %vm479_vm12 = vcmp.eq.s32.totalorder %v1853_v22, %v1751_v23 }
  0xdb   :  { %v1855_v25 = vsub.f32 %v357_v13, %v373_v18  ;;  %vm486_vm1 = vmxor %vm470_vm7, %vm1406_vm2  ;;  %v393_v60 = vsub.f32 %v361_v58, %v377_v7  ;;  %v369_v13 = vadd.f32 %v1763_v28, %v1736_v16  ;;  %vm27_vm7 = vcmask 7168  }
  0xdc   :  { %v554_v50 = vsel %vm522_vm9, %v1909_v47, -inf  ;;  %vm530_vm9 = vmand %vm490_vm13, %vm505_vm4  ;;  %v566_v21 = vsel %vm534_vm5, %v396_v55, inf  ;;  %48 = vst.msk [vmem:[#allocation3 + $0x20] sm:$0xff] %vm27_vm7, %v1407_v15 }
  0xdd   :  { %679 = vmin.xlane.f32.xlu1 %v561_v29  ;;  %v543_v33 = vsel %vm1832_vm8, %v1855_v25, -inf  ;;  %v559_v34 = vsel %vm1842_vm11, %v1855_v25, inf  ;;  %v562_v57 = vsel %vm530_vm9, %v392_v54, inf  ;;  %vm531_vm6 = vmand %vm491_vm0, %vm505_vm4  ;;  %44 = vst.msk [vmem:[#allocation3] sm:$0xff] %vm27_vm7, %v1407_v15 }
  0xde   :  { %598 = vmax.xlane.f32.xlu0 %v545_v30  ;;  %693 = vmin.xlane.f32.xlu2 %v568_v32  ;;  %vm526_vm13 = vmand %vm486_vm1, %vm505_vm4  ;;  %v563_v19 = vsel %vm531_vm6, %v393_v60, inf  ;;  %45 = vst.msk [vmem:[#allocation3 + $0x8] sm:$0xff] %vm27_vm7, %v1407_v15 }
  0xdf   :  { %v239_v61 = vpop.f32.mrf.mxu2  ;;  %v251_v62 = vpop.f32.mrf.mxu3  ;;  %v558_v0 = vsel %vm526_vm13, %v388_v46, inf  ;;  %vm518_vm5 = vmand %vm478_vm15, %vm505_vm4  ;;  %vm483_vm15 = vcmp.eq.s32.totalorder %v466_v4, %v1751_v23  ;;  %46 = vst.msk [vmem:[#allocation3 + $0x10] sm:$0xff] %vm27_vm7, %v1407_v15 }
  0xe0   :  { %v381_v6 = vmul.f32 2.0, %v239_v61  ;;  %v385_v63 = vmul.f32 2.0, %v251_v62  ;;  %v550_v5 = vsel %vm518_vm5, %v396_v55, -inf  ;;  %vm519_vm9 = vmand %vm479_vm12, %vm505_vm4  ;;  %47 = vst.msk [vmem:[#allocation3 + $0x18] sm:$0xff] %vm27_vm7, %v1407_v15 }
  0xe1   :  { %vm523_vm0 = vmand %vm483_vm15, %vm505_vm4  ;;  %49 = vst.msk [vmem:[#allocation3 + $0x28] sm:$0xff] %vm27_vm7, %v1407_v15 }
  0xe2   :  { %v397_v59 = vsub.f32 %v365_v11, %v381_v6  ;;  %v401_v18 = vsub.f32 %v369_v13, %v385_v63  ;;  %50 = vst.msk [vmem:[#allocation3 + $0x30] sm:$0xff] %vm27_vm7, %v1407_v15  ;;  %vm497_vm1 = vmxor %vm481_vm3, %vm1406_vm2 }
  0xe3   :  { %51 = vst.msk [vmem:[#allocation3 + $0x38] sm:$0xff] %vm27_vm7, %v1407_v15  ;;  %vm495_vm6 = vmxor %vm479_vm12, %vm1406_vm2  ;;  %v657_v23 = vld [vmem:[#allocation3 + $0x20] sm:$0xff] }
  0xe4   :  { %v555_v14 = vsel %vm523_vm0, %v401_v18, -inf  ;;  %v551_v16 = vsel %vm519_vm9, %v397_v59, -inf  ;;  %52 = vst.msk [vmem:[#allocation3 + $0x40] sm:$0xff] %vm27_vm7, %v1407_v15  ;;  %vm537_vm8 = vmand %vm497_vm1, %vm505_vm4  ;;  %v653_v43 = vld [vmem:[#allocation3] sm:$0xff] }
  0xe5   :  { %606 = vmax.xlane.f32.xlu1 %v549_v39  ;;  %53 = vst.msk [vmem:[#allocation3 + $0x48] sm:$0xff] %vm27_vm7, %v1407_v15  ;;  %vm535_vm13 = vmand %vm495_vm6, %vm505_vm4  ;;  %v569_v2 = vsel %vm537_vm8, %v1884_v10, inf }
  0xe6   :  { %671 = vmin.xlane.f32.xlu0 %v557_v40  ;;  %614 = vmax.xlane.f32.xlu2 %v553_v42  ;;  %54 = vst.msk [vmem:[#allocation3 + $0x50] sm:$0xff] %vm27_vm7, %v1407_v15  ;;  %v567_v28 = vsel %vm535_vm13, %v397_v59, inf  ;;  %vm515_vm3 = vmand %vm475_vm14, %vm505_vm4 }
  0xe7   :  { %55 = vst.msk [vmem:[#allocation3 + $0x58] sm:$0xff] %vm27_vm7, %v1407_v15  ;;  %v547_v22 = vsel %vm515_vm3, %v393_v60, -inf  ;;  %vm498_vm5 = vmxor %vm482_vm10, %vm1406_vm2 }
  0xe8   :  { %56 = vst.msk [vmem:[#allocation3 + $0x60] sm:$0xff] %vm27_vm7, %v1407_v15  ;;  %vm538_vm12 = vmand %vm498_vm5, %vm505_vm4 }
  0xe9   :  { %57 = vst.msk [vmem:[#allocation3 + $0x68] sm:$0xff] %vm27_vm7, %v1407_v15  ;;  %v570_v48 = vsel %vm538_vm12, %v1909_v47, inf  ;;  %vm499_vm10 = vmxor %vm483_vm15, %vm1406_vm2 }
  0xea   :  { %58 = vst.msk [vmem:[#allocation3 + $0x70] sm:$0xff] %vm27_vm7, %v1407_v15  ;;  %vm539_vm11 = vmand %vm499_vm10, %vm505_vm4 }
  0xeb   :  { %59 = vst.msk [vmem:[#allocation3 + $0x78] sm:$0xff] %vm27_vm7, %v1407_v15  ;;  %v571_v8 = vsel %vm539_vm11, %v401_v18, inf  ;;  %v661_v41 = vld [vmem:[#allocation3 + $0x40] sm:$0xff] }
  0xec   :  { %28 = vst.msk [vmem:[#allocation2] sm:$0xff] %vm27_vm7, %v1408_v3 }
  0xed   :  { %592 = vmax.xlane.f32.xlu1 %v542_v26  ;;  %29 = vst.msk [vmem:[#allocation2 + $0x8] sm:$0xff] %vm27_vm7, %v1408_v3 }
  0xee   :  { %616 = vmax.xlane.f32.xlu0 %v554_v50  ;;  %687 = vmin.xlane.f32.xlu2 %v565_v51  ;;  %30 = vst.msk [vmem:[#allocation2 + $0x10] sm:$0xff] %vm27_vm7, %v1408_v3 }
  0xef   :  { %31 = vst.msk [vmem:[#allocation2 + $0x18] sm:$0xff] %vm27_vm7, %v1408_v3 }
  0xf0   :  { %32 = vst.msk [vmem:[#allocation2 + $0x20] sm:$0xff] %vm27_vm7, %v1408_v3 }
  0xf1   :  { %33 = vst.msk [vmem:[#allocation2 + $0x28] sm:$0xff] %vm27_vm7, %v1408_v3 }
  0xf2   :  { %34 = vst.msk [vmem:[#allocation2 + $0x30] sm:$0xff] %vm27_vm7, %v1408_v3 }
  0xf3   :  { %35 = vst.msk [vmem:[#allocation2 + $0x38] sm:$0xff] %vm27_vm7, %v1408_v3  ;;  %v572_v27 = vld [vmem:[#allocation2] sm:$0xff] }
  0xf4   :  { %36 = vst.msk [vmem:[#allocation2 + $0x40] sm:$0xff] %vm27_vm7, %v1408_v3  ;;  %v573_v42 = vld [vmem:[#allocation2 + $0x8] sm:$0xff] }
  0xf5   :  { %600 = vmax.xlane.f32.xlu1 %v546_v9  ;;  %37 = vst.msk [vmem:[#allocation2 + $0x48] sm:$0xff] %vm27_vm7, %v1408_v3 }
  0xf6   :  { %689 = vmin.xlane.f32.xlu0 %v566_v21  ;;  %681 = vmin.xlane.f32.xlu2 %v562_v57  ;;  %38 = vst.msk [vmem:[#allocation2 + $0x50] sm:$0xff] %vm27_vm7, %v1408_v3  ;;  %v658_v21 = vld [vmem:[#allocation3 + $0x28] sm:$0xff]  ;;  %v665_v57 = vld [vmem:[#allocation3 + $0x60] sm:$0xff] }
  0xf7   :  { %39 = vst.msk [vmem:[#allocation2 + $0x58] sm:$0xff] %vm27_vm7, %v1408_v3 }
  0xf8   :  { %40 = vst.msk [vmem:[#allocation2 + $0x60] sm:$0xff] %vm27_vm7, %v1408_v3  ;;  %v577_v60 = vld [vmem:[#allocation2 + $0x28] sm:$0xff] }
  0xf9   :  { %41 = vst.msk [vmem:[#allocation2 + $0x68] sm:$0xff] %vm27_vm7, %v1408_v3 }
  0xfa   :  { %42 = vst.msk [vmem:[#allocation2 + $0x70] sm:$0xff] %vm27_vm7, %v1408_v3 }
  0xfb   :  { %43 = vst.msk [vmem:[#allocation2 + $0x78] sm:$0xff] %vm27_vm7, %v1408_v3 }
  0xfd   :  { %673 = vmin.xlane.f32.xlu1 %v558_v0 }
  0xfe   :  { %683 = vmin.xlane.f32.xlu0 %v563_v19  ;;  %608 = vmax.xlane.f32.xlu2 %v550_v5 }
  0xff   :  { %v584_v32 = vld [vmem:[#allocation2 + $0x60] sm:$0xff] }
 0x105   :  { %618 = vmax.xlane.f32.xlu1 %v555_v14 }
 0x106   :  { %610 = vmax.xlane.f32.xlu0 %v551_v16  ;;  %594 = vmax.xlane.f32.xlu2 %v543_v33  ;;  %v580_v33 = vld [vmem:[#allocation2 + $0x40] sm:$0xff] }
 0x10d   :  { %691 = vmin.xlane.f32.xlu1 %v567_v28 }
 0x10e   :  { %695 = vmin.xlane.f32.xlu0 %v569_v2  ;;  %602 = vmax.xlane.f32.xlu2 %v547_v22 }
 0x115   :  { %697 = vmin.xlane.f32.xlu1 %v570_v48 }
 0x116   :  { %675 = vmin.xlane.f32.xlu2 %v559_v34  ;;  %v576_v34 = vld [vmem:[#allocation2 + $0x20] sm:$0xff] }
 0x11e   :  { %699 = vmin.xlane.f32.xlu2 %v571_v8 }
 0x139   :  { %v678_v25 = vpop.xlane.xlu0 %677  ;;  %v589_v29 = vpop.xlane.xlu2 %588 }
 0x13a   :  { %v705_v30 = vmin.f32 %v657_v23, %v678_v25  ;;  %v620_v31 = vmax.f32 %v572_v27, %v589_v29  ;;  %v581_v23 = vld [vmem:[#allocation2 + $0x48] sm:$0xff] }
 0x13b   :  { %v585_v25 = vld [vmem:[#allocation2 + $0x68] sm:$0xff] }
 0x13c   :  { %721 = vst.msk [vmem:[#allocation3 + $0x20] sm:$0xff] %vm27_vm7, %v705_v30 }
 0x13d   :  { %637 = vst.msk [vmem:[#allocation2] sm:$0xff] %vm27_vm7, %v620_v31 }
 0x140   :  { %v613_v24 = vpop.xlane.xlu1 %612 }
 0x141   :  { %v605_v35 = vpop.xlane.xlu0 %604  ;;  %v632_v36 = vmax.f32 %v584_v32, %v613_v24  ;;  %v597_v38 = vpop.xlane.xlu2 %596  ;;  %v654_v24 = vld [vmem:[#allocation3 + $0x8] sm:$0xff] }
 0x142   :  { %v628_v37 = vmax.f32 %v580_v33, %v605_v35  ;;  %v624_v12 = vmax.f32 %v576_v34, %v597_v38 }
 0x143   :  { %v964_v10 = vld [vmem:[#allocation3 + $0x20] sm:$0xff]  ;;  %649 = vst.msk [vmem:[#allocation2 + $0x60] sm:$0xff] %vm27_vm7, %v632_v36 }
 0x144   :  { %v2056_v20 = vmax.f32 %v964_v10, 1e-16  ;;  %v736_v39 = vld [vmem:[#allocation2] sm:$0xff]  ;;  %645 = vst.msk [vmem:[#allocation2 + $0x40] sm:$0xff] %vm27_vm7, %v628_v37 }
 0x145   :  { %v2059_v40 = vmax.f32 %v736_v39, 1e-16  ;;  %641 = vst.msk [vmem:[#allocation2 + $0x20] sm:$0xff] %vm27_vm7, %v624_v12 }
 0x146   :  { %1341 = vrsqrt.f32 %v2056_v20  ;;  %vm1047_vm2 = vcmp.eq.f32.partialorder %v2056_v20, inf  ;;  %v1050_v35 = vand.u32 2147483648, %v2056_v20  ;;  %vm1049_vm14 = vcmp.eq.f32.partialorder %v2056_v20, 0.0 }
 0x147   :  { %1343 = vrsqrt.f32 %v2059_v40  ;;  %v778_v36 = vand.u32 2147483648, %v2059_v40  ;;  %vm775_vm15 = vcmp.eq.f32.partialorder %v2059_v40, inf  ;;  %vm777_vm1 = vcmp.eq.f32.partialorder %v2059_v40, 0.0 }
 0x148   :  { %v686_v44 = vpop.xlane.xlu1 %685 }
 0x149   :  { %v591_v45 = vpop.xlane.xlu0 %590  ;;  %v709_v46 = vmin.f32 %v661_v41, %v686_v44  ;;  %v670_v47 = vpop.xlane.xlu2 %669 }
 0x14a   :  { %v621_v1 = vmax.f32 %v573_v42, %v591_v45  ;;  %v748_v17 = vld [vmem:[#allocation2 + $0x60] sm:$0xff]  ;;  %v701_v49 = vmin.f32 %v653_v43, %v670_v47 }
 0x14b   :  { %v2065_v50 = vmax.f32 %v748_v17, 1e-16  ;;  %v744_v51 = vld [vmem:[#allocation2 + $0x40] sm:$0xff]  ;;  %725 = vst.msk [vmem:[#allocation3 + $0x40] sm:$0xff] %vm27_vm7, %v709_v46 }
 0x14c   :  { %v1342_v26 = vpop.eup %1341  ;;  %v2071_v54 = vmax.f32 %v744_v51, 1e-16  ;;  %v740_v55 = vld [vmem:[#allocation2 + $0x20] sm:$0xff]  ;;  %717 = vst.msk [vmem:[#allocation3] sm:$0xff] %vm27_vm7, %v701_v49 }
 0x14d   :  { %v2068_v52 = vpop.eup %1343  ;;  %v1041_v53 = vmul.f32 %v1342_v26, %v2056_v20  ;;  %1345 = vrsqrt.f32 %v2065_v50  ;;  %638 = vst.msk [vmem:[#allocation2 + $0x8] sm:$0xff] %vm27_vm7, %v621_v1  ;;  %v2079_v9 = vmax.f32 %v740_v55, 1e-16  ;;  %vm919_vm8 = vcmp.eq.f32.partialorder %v2065_v50, inf }
 0x14e   :  { %v769_v56 = vmul.f32 %v2068_v52, %v2059_v40  ;;  %1347 = vrsqrt.f32 %v2071_v54  ;;  %v874_v37 = vand.u32 2147483648, %v2071_v54  ;;  %vm871_vm9 = vcmp.eq.f32.partialorder %v2071_v54, inf }
 0x14f   :  { %v1042_v7 = vmul.f32 %v1342_v26, %v1041_v53  ;;  %1349 = vrsqrt.f32 %v2079_v9  ;;  %vm823_vm4 = vcmp.eq.f32.partialorder %v2079_v9, inf  ;;  %vm825_vm0 = vcmp.eq.f32.partialorder %v2079_v9, 0.0 }
 0x150   :  { %v680_v58 = vpop.xlane.xlu1 %679  ;;  %v770_v6 = vmul.f32 %v2068_v52, %v769_v56  ;;  %v826_v55 = vand.u32 2147483648, %v2079_v9  ;;  %vm873_vm6 = vcmp.eq.f32.partialorder %v2071_v54, 0.0  ;;  %vm921_vm10 = vcmp.eq.f32.partialorder %v2065_v50, 0.0 }
 0x151   :  { %v599_v61 = vpop.xlane.xlu0 %598  ;;  %v1043_v62 = vmul.f32 0.5, %v1042_v7  ;;  %v694_v63 = vpop.xlane.xlu2 %693  ;;  %v706_v19 = vmin.f32 %v658_v21, %v680_v58 }
 0x152   :  { %v968_v0 = vld [vmem:[#allocation3 + $0x40] sm:$0xff]  ;;  %v713_v4 = vmin.f32 %v665_v57, %v694_v63  ;;  %v625_v15 = vmax.f32 %v577_v60, %v599_v61  ;;  %v771_v28 = vmul.f32 0.5, %v770_v6 }
 0x153   :  { %v2083_v5 = vpop.eup %1345  ;;  %v2085_v11 = vmax.f32 %v968_v0, 1e-16  ;;  %v960_v13 = vld [vmem:[#allocation3] sm:$0xff]  ;;  %722 = vst.msk [vmem:[#allocation3 + $0x28] sm:$0xff] %vm27_vm7, %v706_v19  ;;  %v1044_v16 = vsub.f32 1.5, %v1043_v62 }
 0x154   :  { %v1348_v59 = vpop.eup %1347  ;;  %v913_v18 = vmul.f32 %v2083_v5, %v2065_v50  ;;  %v2089_v14 = vmax.f32 %v960_v13, 1e-16  ;;  %729 = vst.msk [vmem:[#allocation3 + $0x60] sm:$0xff] %vm27_vm7, %v713_v4  ;;  %v772_v31 = vsub.f32 1.5, %v771_v28  ;;  %v737_v33 = vld [vmem:[#allocation2 + $0x8] sm:$0xff] }
 0x155   :  { %v865_v2 = vmul.f32 %v1348_v59, %v2071_v54  ;;  %1351 = vrsqrt.f32 %v2085_v11  ;;  %642 = vst.msk [vmem:[#allocation2 + $0x28] sm:$0xff] %vm27_vm7, %v625_v15  ;;  %v1350_v22 = vpop.eup %1349  ;;  %v1045_v30 = vmul.f32 %v1342_v26, %v1044_v16  ;;  %v2108_v45 = vmax.f32 %v737_v33, 1e-16 }
 0x156   :  { %v914_v48 = vmul.f32 %v2083_v5, %v913_v18  ;;  %1353 = vrsqrt.f32 %v2089_v14  ;;  %v817_v8 = vmul.f32 %v1350_v22, %v2079_v9  ;;  %v773_v26 = vmul.f32 %v2068_v52, %v772_v31 }
 0x157   :  { %v866_v3 = vmul.f32 %v1348_v59, %v865_v2  ;;  %v1046_v49 = vmul.f32 %v1045_v30, %v2056_v20  ;;  %1355 = vrsqrt.f32 %v2108_v45  ;;  %vm1095_vm13 = vcmp.eq.f32.partialorder %v2085_v11, inf }
 0x158   :  { %v607_v27 = vpop.xlane.xlu1 %606  ;;  %v818_v38 = vmul.f32 %v1350_v22, %v817_v8  ;;  %v915_v12 = vmul.f32 0.5, %v914_v48  ;;  %v774_v19 = vmul.f32 %v773_v26, %v2059_v40  ;;  %vm1097_vm3 = vcmp.eq.f32.partialorder %v2085_v11, 0.0 }
 0x159   :  { %v672_v29 = vpop.xlane.xlu0 %671  ;;  %v867_v32 = vmul.f32 0.5, %v866_v3  ;;  %v615_v34 = vpop.xlane.xlu2 %614  ;;  %v629_v41 = vmax.f32 %v581_v23, %v607_v27  ;;  %v1048_v0 = vsel %vm1047_vm2, %v2056_v20, %v1046_v49  ;;  %v1098_v48 = vand.u32 2147483648, %v2085_v11 }
 0x15a   :  { %v633_v42 = vmax.f32 %v585_v25, %v615_v34  ;;  %v819_v43 = vmul.f32 0.5, %v818_v38  ;;  %v965_v46 = vld [vmem:[#allocation3 + $0x28] sm:$0xff]  ;;  %v702_v1 = vmin.f32 %v654_v24, %v672_v29  ;;  %v916_v21 = vsub.f32 1.5, %v915_v12 }
 0x15b   :  { %v1352_v10 = vpop.eup %1351  ;;  %v868_v39 = vsub.f32 1.5, %v867_v32  ;;  %v972_v47 = vld [vmem:[#allocation3 + $0x60] sm:$0xff]  ;;  %646 = vst.msk [vmem:[#allocation2 + $0x48] sm:$0xff] %vm27_vm7, %v629_v41  ;;  %v2117_v57 = vmax.f32 %v965_v46, 1e-16  ;;  %v1051_v8 = vsel %vm1049_vm14, %v1050_v35, %v1048_v0  ;;  %vm999_vm5 = vcmp.eq.f32.partialorder %v2089_v14, inf }
 0x15c   :  { %v1089_v44 = vmul.f32 %v1352_v10, %v2085_v11  ;;  %v1354_v17 = vpop.eup %1353  ;;  %v820_v53 = vsub.f32 1.5, %v819_v43  ;;  %650 = vst.msk [vmem:[#allocation2 + $0x68] sm:$0xff] %vm27_vm7, %v633_v42  ;;  %v2119_v58 = vmax.f32 %v972_v47, 1e-16  ;;  %v741_v60 = vld [vmem:[#allocation2 + $0x28] sm:$0xff]  ;;  %v917_v28 = vmul.f32 %v2083_v5, %v916_v21  ;;  %v574_v21 = vld [vmem:[#allocation2 + $0x10] sm:$0xff] }
 0x15d   :  { %v869_v51 = vmul.f32 %v1348_v59, %v868_v39  ;;  %v993_v7 = vmul.f32 %v1354_v17, %v2089_v14  ;;  %718 = vst.msk [vmem:[#allocation3 + $0x8] sm:$0xff] %vm27_vm7, %v702_v1  ;;  %1357 = vrsqrt.f32 %v2117_v57  ;;  %v2139_v16 = vmax.f32 %v741_v60, 1e-16  ;;  %v2159_v25 = vpop.eup %1355 }
 0x15e   :  { %v1090_v56 = vmul.f32 %v1352_v10, %v1089_v44  ;;  %v821_v52 = vmul.f32 %v1350_v22, %v820_v53  ;;  %1359 = vrsqrt.f32 %v2119_v58  ;;  %v776_v5 = vsel %vm775_vm15, %v2059_v40, %v774_v19 }
 0x15f   :  { %v994_v62 = vmul.f32 %v1354_v17, %v993_v7  ;;  %v870_v4 = vmul.f32 %v869_v51, %v2071_v54  ;;  %1361 = vrsqrt.f32 %v2139_v16  ;;  %v918_v33 = vmul.f32 %v917_v28, %v2065_v50 }
 0x160   :  { %v1091_v61 = vmul.f32 0.5, %v1090_v56  ;;  %v2125_v6 = vpop.xlane.xlu1 %592  ;;  %v822_v15 = vmul.f32 %v821_v52, %v2079_v9  ;;  %vm1001_vm12 = vcmp.eq.f32.partialorder %v2089_v14, 0.0  ;;  %v1002_v34 = vand.u32 2147483648, %v2089_v14 }
 0x161   :  { %v2127_v63 = vpop.xlane.xlu0 %616  ;;  %v2135_v13 = vpop.xlane.xlu2 %687  ;;  %v995_v18 = vmul.f32 0.5, %v994_v62  ;;  %v872_v23 = vsel %vm871_vm9, %v2071_v54, %v870_v4  ;;  %v779_v41 = vsel %vm777_vm1, %v778_v36, %v776_v5  ;;  %v781_v1 = vmul.f32 %v2159_v25, %v2108_v45  ;;  %v662_v62 = vld [vmem:[#allocation3 + $0x48] sm:$0xff]  ;;  %v586_v4 = vld [vmem:[#allocation2 + $0x70] sm:$0xff] }
 0x162   :  { %v1092_v59 = vsub.f32 1.5, %v1091_v61  ;;  %v824_v2 = vsel %vm823_vm4, %v2079_v9, %v822_v15  ;;  %v745_v20 = vld [vmem:[#allocation2 + $0x48] sm:$0xff]  ;;  %v875_v42 = vsel %vm873_vm6, %v874_v37, %v872_v23  ;;  %vm1059_vm11 = vcmp.eq.f32.partialorder %v2117_v57, inf }
 0x163   :  { %v996_v3 = vsub.f32 1.5, %v995_v18  ;;  %v827_v27 = vsel %vm825_vm0, %v826_v55, %v824_v2  ;;  %v1358_v32 = vpop.eup %1357  ;;  %v2186_v44 = vmax.f32 %v745_v20, 1e-16  ;;  %v922_v55 = vand.u32 2147483648, %v2065_v50  ;;  %v749_v7 = vld [vmem:[#allocation2 + $0x68] sm:$0xff]  ;;  %v578_v20 = vld [vmem:[#allocation2 + $0x30] sm:$0xff] }
 0x164   :  { %v1093_v22 = vmul.f32 %v1352_v10, %v1092_v59  ;;  %v1188_v29 = vsub.f32 %v827_v27, %v1051_v8  ;;  %v1053_v38 = vmul.f32 %v1358_v32, %v2117_v57  ;;  %v1360_v39 = vpop.eup %1359  ;;  %v961_v61 = vld [vmem:[#allocation3 + $0x8] sm:$0xff]  ;;  %v782_v15 = vmul.f32 %v2159_v25, %v781_v1 }
 0x165   :  { %v997_v31 = vmul.f32 %v1354_v17, %v996_v3  ;;  %v1137_v54 = vmul.f32 %v1360_v39, %v2119_v58  ;;  %1363 = vrsqrt.f32 %v2186_v44  ;;  %v1362_v17 = vpop.eup %1361  ;;  %vm1061_vm2 = vcmp.eq.f32.partialorder %v2117_v57, 0.0 }
 0x166   :  { %v1094_v30 = vmul.f32 %v1093_v22, %v2085_v11  ;;  %v1220_v9 = vmax.f32 %v1188_v29, 0.0  ;;  %v1054_v36 = vmul.f32 %v1358_v32, %v1053_v38  ;;  %v829_v56 = vmul.f32 %v1362_v17, %v2139_v16 }
 0x167   :  { %v998_v35 = vmul.f32 %v997_v31, %v2089_v14  ;;  %v1138_v53 = vmul.f32 %v1360_v39, %v1137_v54  ;;  %v2223_v28 = vmax.f32 %v749_v7, 1e-16  ;;  %v2227_v3 = vmax.f32 %v961_v61, 1e-16 }
 0x168   :  { %v1096_v24 = vsel %vm1095_vm13, %v2085_v11, %v1094_v30  ;;  %v2172_v10 = vpop.xlane.xlu1 %600  ;;  %1236 = vst.msk [vmem:[%s2645_s6 + $0x20] sm:$0xff] %vm27_vm7, %v1220_v9  ;;  %v920_v11 = vsel %vm919_vm8, %v2065_v50, %v918_v33  ;;  %v1055_v51 = vmul.f32 0.5, %v1054_v36  ;;  %v1062_v50 = vand.u32 2147483648, %v2117_v57  ;;  %v660_v36 = vld [vmem:[#allocation3 + $0x38] sm:$0xff] }
 0x169   :  { %v2174_v12 = vpop.xlane.xlu0 %689  ;;  %v1099_v43 = vsel %vm1097_vm3, %v1098_v48, %v1096_v24  ;;  %v2188_v46 = vpop.xlane.xlu2 %681  ;;  %v1000_v40 = vsel %vm999_vm5, %v2089_v14, %v998_v35  ;;  %v1139_v52 = vmul.f32 0.5, %v1138_v53  ;;  %v2213_v0 = vsel %vm921_vm10, %v922_v55, %v920_v11 }
 0x16a   :  { %v1192_v47 = vsub.f32 %v875_v42, %v1099_v43  ;;  %v1003_v37 = vsel %vm1001_vm12, %v1002_v34, %v1000_v40  ;;  %v1056_v60 = vsub.f32 1.5, %v1055_v51  ;;  %v830_v19 = vmul.f32 %v1362_v17, %v829_v56 }
 0x16b   :  { %v1184_v26 = vsub.f32 %v779_v41, %v1003_v37  ;;  %v1140_v18 = vsub.f32 1.5, %v1139_v52  ;;  %v2225_v22 = vpop.eup %1363  ;;  %v622_v8 = vmax.f32 %v574_v21, %v2125_v6  ;;  %v710_v5 = vmin.f32 %v662_v62, %v2135_v13  ;;  %v659_v6 = vld [vmem:[#allocation3 + $0x30] sm:$0xff]  ;;  %v587_v37 = vld [vmem:[#allocation2 + $0x78] sm:$0xff] }
 0x16c   :  { %v1224_v49 = vmax.f32 %v1192_v47, 0.0  ;;  %v1057_v59 = vmul.f32 %v1358_v32, %v1056_v60  ;;  %v831_v48 = vmul.f32 0.5, %v830_v19  ;;  %v877_v30 = vmul.f32 %v2225_v22, %v2186_v44  ;;  %v663_v13 = vld [vmem:[#allocation3 + $0x50] sm:$0xff] }
 0x16d   :  { %v1216_v14 = vmax.f32 %v1184_v26, 0.0  ;;  %v1141_v29 = vmul.f32 %v1360_v39, %v1140_v18  ;;  %v634_v31 = vmax.f32 %v586_v4, %v2127_v63  ;;  %vm1143_vm4 = vcmp.eq.f32.partialorder %v2119_v58, inf  ;;  %639 = vst.msk [vmem:[#allocation2 + $0x10] sm:$0xff] %vm27_vm7, %v622_v8  ;;  %v655_v63 = vld [vmem:[#allocation3 + $0x10] sm:$0xff] }
 0x16e   :  { %1240 = vst.msk [vmem:[%s2645_s6 + $0x40] sm:$0xff] %vm27_vm7, %v1224_v49  ;;  %v1058_v27 = vmul.f32 %v1057_v59, %v2117_v57  ;;  %vm1145_vm14 = vcmp.eq.f32.partialorder %v2119_v58, 0.0  ;;  %v832_v33 = vsub.f32 1.5, %v831_v48  ;;  %1365 = vrsqrt.f32 %v2227_v3  ;;  %v582_v41 = vld [vmem:[#allocation2 + $0x50] sm:$0xff] }
 0x16f   :  { %1232 = vst.msk [vmem:[%s2645_s6] sm:$0xff] %vm27_vm7, %v1216_v14  ;;  %v783_v34 = vmul.f32 0.5, %v782_v15  ;;  %v1142_v9 = vmul.f32 %v1141_v29, %v2119_v58  ;;  %v1146_v24 = vand.u32 2147483648, %v2119_v58  ;;  %vm835_vm15 = vcmp.eq.f32.partialorder %v2139_v16, inf  ;;  %v575_v15 = vld [vmem:[#allocation2 + $0x18] sm:$0xff] }
 0x170   :  { %v674_v2 = vpop.xlane.xlu1 %673  ;;  %726 = vst.msk [vmem:[#allocation3 + $0x48] sm:$0xff] %vm27_vm7, %v710_v5  ;;  %v833_v35 = vmul.f32 %v1362_v17, %v832_v33  ;;  %v878_v38 = vmul.f32 %v2225_v22, %v877_v30  ;;  %1367 = vrsqrt.f32 %v2223_v28  ;;  %v626_v39 = vmax.f32 %v578_v20, %v2172_v10 }
 0x171   :  { %v2231_v23 = vpop.xlane.xlu0 %683  ;;  %v609_v32 = vpop.xlane.xlu2 %608  ;;  %651 = vst.msk [vmem:[#allocation2 + $0x70] sm:$0xff] %vm27_vm7, %v634_v31  ;;  %v1060_v42 = vsel %vm1059_vm11, %v2117_v57, %v1058_v27  ;;  %v1144_v43 = vsel %vm1143_vm4, %v2119_v58, %v1142_v9  ;;  %v707_v47 = vmin.f32 %v659_v6, %v2188_v46  ;;  %v711_v40 = vmin.f32 %v663_v13, %v2174_v12 }
 0x172   :  { %v1147_v54 = vsel %vm1145_vm14, %v1146_v24, %v1144_v43  ;;  %v834_v11 = vmul.f32 %v833_v35, %v2139_v16  ;;  %vm837_vm9 = vcmp.eq.f32.partialorder %v2139_v16, 0.0  ;;  %643 = vst.msk [vmem:[#allocation2 + $0x30] sm:$0xff] %vm27_vm7, %v626_v39  ;;  %v703_v10 = vmin.f32 %v655_v63, %v674_v2 }
 0x173   :  { %v784_v1 = vsub.f32 1.5, %v783_v34  ;;  %v1196_v17 = vsub.f32 %v2213_v0, %v1147_v54  ;;  %v838_v49 = vand.u32 2147483648, %v2139_v16  ;;  %723 = vst.msk [vmem:[#allocation3 + $0x30] sm:$0xff] %vm27_vm7, %v707_v47  ;;  %v630_v12 = vmax.f32 %v582_v41, %v609_v32  ;;  %v583_v0 = vld [vmem:[#allocation2 + $0x58] sm:$0xff] }
 0x174   :  { %v1366_v26 = vpop.eup %1365  ;;  %v1063_v58 = vsel %vm1061_vm2, %v1062_v50, %v1060_v42  ;;  %v836_v51 = vsel %vm835_vm15, %v2139_v16, %v834_v11  ;;  %v879_v53 = vmul.f32 0.5, %v878_v38  ;;  %727 = vst.msk [vmem:[#allocation3 + $0x50] sm:$0xff] %vm27_vm7, %v711_v40  ;;  %v708_v55 = vmin.f32 %v660_v36, %v2231_v23  ;;  %v738_v14 = vld [vmem:[#allocation2 + $0x10] sm:$0xff] }
 0x175   :  { %v1228_v56 = vmax.f32 %v1196_v17, 0.0  ;;  %v839_v7 = vsel %vm837_vm9, %v838_v49, %v836_v51  ;;  %v1005_v21 = vmul.f32 %v1366_v26, %v2227_v3  ;;  %719 = vst.msk [vmem:[#allocation3 + $0x10] sm:$0xff] %vm27_vm7, %v703_v10  ;;  %v2278_v61 = vmax.f32 %v738_v14, 1e-16 }
 0x176   :  { %v2276_v60 = vpop.eup %1367  ;;  %v1189_v52 = vsub.f32 %v839_v7, %v1063_v58  ;;  %647 = vst.msk [vmem:[#allocation2 + $0x50] sm:$0xff] %vm27_vm7, %v630_v12  ;;  %v785_v19 = vmul.f32 %v2159_v25, %v784_v1  ;;  %v880_v2 = vsub.f32 1.5, %v879_v53  ;;  %vm787_vm0 = vcmp.eq.f32.partialorder %v2108_v45, inf }
 0x177   :  { %v969_v62 = vld [vmem:[#allocation3 + $0x48] sm:$0xff]  ;;  %1244 = vst.msk [vmem:[%s2645_s6 + $0x60] sm:$0xff] %vm27_vm7, %v1228_v56  ;;  %v1006_v16 = vmul.f32 %v1366_v26, %v1005_v21  ;;  %1369 = vrsqrt.f32 %v2278_v61  ;;  %v925_v5 = vmul.f32 %v2276_v60, %v2223_v28  ;;  %vm789_vm1 = vcmp.eq.f32.partialorder %v2108_v45, 0.0 }
 0x178   :  { %v619_v46 = vpop.xlane.xlu1 %618  ;;  %v2286_v4 = vmax.f32 %v969_v62, 1e-16  ;;  %v1221_v18 = vmax.f32 %v1189_v52, 0.0  ;;  %724 = vst.msk [vmem:[#allocation3 + $0x38] sm:$0xff] %vm27_vm7, %v708_v55  ;;  %v786_v29 = vmul.f32 %v785_v19, %v2108_v45  ;;  %v881_v20 = vmul.f32 %v2225_v22, %v880_v2  ;;  %v750_v32 = vld [vmem:[#allocation2 + $0x70] sm:$0xff] }
 0x179   :  { %v635_v57 = vmax.f32 %v587_v37, %v619_v46  ;;  %v611_v50 = vpop.xlane.xlu0 %610  ;;  %v595_v59 = vpop.xlane.xlu2 %594  ;;  %v1007_v48 = vmul.f32 0.5, %v1006_v16  ;;  %v742_v8 = vld [vmem:[#allocation2 + $0x30] sm:$0xff]  ;;  %v790_v24 = vand.u32 2147483648, %v2108_v45  ;;  %vm883_vm6 = vcmp.eq.f32.partialorder %v2186_v44, inf }
 0x17a   :  { %v631_v25 = vmax.f32 %v583_v0, %v611_v50  ;;  %1237 = vst.msk [vmem:[%s2645_s6 + $0x28] sm:$0xff] %vm27_vm7, %v1221_v18  ;;  %1371 = vrsqrt.f32 %v2286_v4  ;;  %v966_v23 = vld [vmem:[#allocation3 + $0x30] sm:$0xff]  ;;  %v623_v27 = vmax.f32 %v575_v15, %v595_v59  ;;  %v2300_v33 = vmax.f32 %v742_v8, 1e-16 }
 0x17b   :  { %652 = vst.msk [vmem:[#allocation2 + $0x78] sm:$0xff] %vm27_vm7, %v635_v57  ;;  %v1008_v30 = vsub.f32 1.5, %v1007_v48  ;;  %v970_v31 = vld [vmem:[#allocation3 + $0x50] sm:$0xff]  ;;  %v2302_v6 = vmax.f32 %v966_v23, 1e-16  ;;  %v926_v22 = vmul.f32 %v2276_v60, %v925_v5  ;;  %v788_v63 = vsel %vm787_vm0, %v2108_v45, %v786_v29 }
 0x17c   :  { %v2306_v34 = vmax.f32 %v970_v31, 1e-16  ;;  %648 = vst.msk [vmem:[#allocation2 + $0x58] sm:$0xff] %vm27_vm7, %v631_v25  ;;  %1373 = vrsqrt.f32 %v2300_v33  ;;  %v2320_v39 = vmax.f32 %v750_v32, 1e-16  ;;  %v882_v42 = vmul.f32 %v881_v20, %v2186_v44  ;;  %v962_v47 = vld [vmem:[#allocation3 + $0x10] sm:$0xff] }
 0x17d   :  { %v1009_v13 = vmul.f32 %v1366_v26, %v1008_v30  ;;  %v2309_v9 = vpop.eup %1369  ;;  %640 = vst.msk [vmem:[#allocation2 + $0x18] sm:$0xff] %vm27_vm7, %v623_v27  ;;  %vm1011_vm8 = vcmp.eq.f32.partialorder %v2227_v3, inf  ;;  %v1014_v43 = vand.u32 2147483648, %v2227_v3  ;;  %1375 = vrsqrt.f32 %v2302_v6  ;;  %v746_v54 = vld [vmem:[#allocation2 + $0x50] sm:$0xff] }
 0x17e   :  { %v793_v38 = vmul.f32 %v2309_v9, %v2278_v61  ;;  %vm1013_vm13 = vcmp.eq.f32.partialorder %v2227_v3, 0.0  ;;  %1377 = vrsqrt.f32 %v2306_v34  ;;  %v791_v11 = vsel %vm789_vm1, %v790_v24, %v788_v63 }
 0x17f   :  { %v1010_v35 = vmul.f32 %v1009_v13, %v2227_v3  ;;  %v2332_v10 = vmul.f32 0.5, %v926_v22  ;;  %1379 = vrsqrt.f32 %v2320_v39  ;;  %v2336_v12 = vmax.f32 %v962_v47, 1e-16  ;;  %v967_v0 = vld [vmem:[#allocation3 + $0x38] sm:$0xff] }
 0x180   :  { %v1372_v41 = vpop.eup %1371  ;;  %v794_v1 = vmul.f32 %v2309_v9, %v793_v38  ;;  %v884_v46 = vsel %vm883_vm6, %v2186_v44, %v882_v42  ;;  %vm885_vm3 = vcmp.eq.f32.partialorder %v2186_v44, 0.0  ;;  %v2342_v45 = vmax.f32 %v746_v54, 1e-16 }
 0x181   :  { %v1012_v40 = vsel %vm1011_vm8, %v2227_v3, %v1010_v35  ;;  %v1101_v36 = vmul.f32 %v1372_v41, %v2286_v4  ;;  %v886_v26 = vand.u32 2147483648, %v2186_v44  ;;  %v928_v56 = vsub.f32 1.5, %v2332_v10  ;;  %v2361_v48 = vpop.xlane.xlu2 %602 }
 0x182   :  { %v1015_v37 = vsel %vm1013_vm13, %v1014_v43, %v1012_v40  ;;  %v1374_v3 = vpop.eup %1373  ;;  %v795_v7 = vmul.f32 0.5, %v794_v1  ;;  %v802_v21 = vand.u32 2147483648, %v2278_v61  ;;  %1381 = vrsqrt.f32 %v2336_v12  ;;  %v751_v2 = vld [vmem:[#allocation2 + $0x78] sm:$0xff] }
 0x183   :  { %v1185_v17 = vsub.f32 %v791_v11, %v1015_v37  ;;  %v1102_v49 = vmul.f32 %v1372_v41, %v1101_v36  ;;  %v841_v53 = vmul.f32 %v1374_v3, %v2300_v33  ;;  %v1376_v55 = vpop.eup %1375  ;;  %v887_v57 = vsel %vm885_vm3, %v886_v26, %v884_v46 }
 0x184   :  { %v1378_v14 = vpop.eup %1377  ;;  %v1065_v62 = vmul.f32 %v1376_v55, %v2302_v6  ;;  %vm1107_vm5 = vcmp.eq.f32.partialorder %v2286_v4, inf  ;;  %vm1109_vm12 = vcmp.eq.f32.partialorder %v2286_v4, 0.0  ;;  %1383 = vrsqrt.f32 %v2342_v45 }
 0x185   :  { %v1217_v58 = vmax.f32 %v1185_v17, 0.0  ;;  %v1103_v51 = vmul.f32 0.5, %v1102_v49  ;;  %v842_v52 = vmul.f32 %v1374_v3, %v841_v53  ;;  %v1113_v50 = vmul.f32 %v1378_v14, %v2306_v34  ;;  %v2358_v19 = vpop.eup %1379  ;;  %v692_v49 = vpop.xlane.xlu1 %691 }
 0x186   :  { %v1110_v15 = vand.u32 2147483648, %v2286_v4  ;;  %v1066_v18 = vmul.f32 %v1376_v55, %v1065_v62  ;;  %v796_v8 = vsub.f32 1.5, %v795_v7  ;;  %vm847_vm10 = vcmp.eq.f32.partialorder %v2300_v33, inf  ;;  %v747_v62 = vld [vmem:[#allocation2 + $0x58] sm:$0xff] }
 0x187   :  { %1233 = vst.msk [vmem:[%s2645_s6 + $0x8] sm:$0xff] %vm27_vm7, %v1217_v58  ;;  %v1104_v44 = vsub.f32 1.5, %v1103_v51  ;;  %v843_v59 = vmul.f32 0.5, %v842_v52  ;;  %v1114_v25 = vmul.f32 %v1378_v14, %v1113_v50  ;;  %v2364_v5 = vmax.f32 %v967_v0, 1e-16  ;;  %v739_v0 = vld [vmem:[#allocation2 + $0x18] sm:$0xff] }
 0x188   :  { %vm849_vm11 = vcmp.eq.f32.partialorder %v2300_v33, 0.0  ;;  %v1067_v29 = vmul.f32 0.5, %v1066_v18  ;;  %v1382_v30 = vpop.eup %1381  ;;  %v937_v31 = vmul.f32 %v2358_v19, %v2320_v39  ;;  %v850_v20 = vand.u32 2147483648, %v2300_v33  ;;  %v666_v18 = vld [vmem:[#allocation3 + $0x68] sm:$0xff] }
 0x189   :  { %v1105_v16 = vmul.f32 %v1372_v41, %v1104_v44  ;;  %v844_v27 = vsub.f32 1.5, %v843_v59  ;;  %v1115_v32 = vmul.f32 0.5, %v1114_v25  ;;  %v2371_v13 = vmax.f32 %v751_v2, 1e-16  ;;  %v664_v59 = vld [vmem:[#allocation3 + $0x58] sm:$0xff] }
 0x18a   :  { %vm799_vm2 = vcmp.eq.f32.partialorder %v2278_v61, inf  ;;  %v1068_v63 = vsub.f32 1.5, %v1067_v29  ;;  %v1017_v35 = vmul.f32 %v1382_v30, %v2336_v12  ;;  %v1384_v38 = vpop.eup %1383  ;;  %v797_v41 = vmul.f32 %v2309_v9, %v796_v8 }
 0x18b   :  { %v1106_v23 = vmul.f32 %v1105_v16, %v2286_v4  ;;  %v845_v22 = vmul.f32 %v1374_v3, %v844_v27  ;;  %v1116_v43 = vsub.f32 1.5, %v1115_v32  ;;  %1385 = vrsqrt.f32 %v2364_v5 }
 0x18c   :  { %v1069_v36 = vmul.f32 %v1376_v55, %v1068_v63  ;;  %v1018_v54 = vmul.f32 %v1382_v30, %v1017_v35  ;;  %vm1071_vm4 = vcmp.eq.f32.partialorder %v2302_v6, inf  ;;  %vm1073_vm14 = vcmp.eq.f32.partialorder %v2302_v6, 0.0  ;;  %v2405_v55 = vpop.xlane.xlu2 %675 }
 0x18d   :  { %v1108_v24 = vsel %vm1107_vm5, %v2286_v4, %v1106_v23  ;;  %v846_v40 = vmul.f32 %v845_v22, %v2300_v33  ;;  %v1074_v11 = vand.u32 2147483648, %v2302_v6  ;;  %v889_v37 = vmul.f32 %v1384_v38, %v2342_v45 }
 0x18e   :  { %v1111_v42 = vsel %vm1109_vm12, %v1110_v15, %v1108_v24  ;;  %vm801_vm15 = vcmp.eq.f32.partialorder %v2278_v61, 0.0  ;;  %v938_v9 = vmul.f32 %v2358_v19, %v937_v31  ;;  %v1070_v17 = vmul.f32 %v1069_v36, %v2302_v6 }
 0x18f   :  { %v1193_v47 = vsub.f32 %v887_v57, %v1111_v42  ;;  %v848_v1 = vsel %vm847_vm10, %v2300_v33, %v846_v40  ;;  %vm1119_vm9 = vcmp.eq.f32.partialorder %v2306_v34, inf  ;;  %v798_v3 = vmul.f32 %v797_v41, %v2278_v61  ;;  %v696_v33 = vpop.xlane.xlu0 %695 }
 0x190   :  { %v1117_v46 = vmul.f32 %v1378_v14, %v1116_v43  ;;  %v1019_v26 = vmul.f32 0.5, %v1018_v54  ;;  %v890_v58 = vmul.f32 %v1384_v38, %v889_v37  ;;  %v1072_v51 = vsel %vm1071_vm4, %v2302_v6, %v1070_v17  ;;  %v698_v54 = vpop.xlane.xlu1 %697 }
 0x191   :  { %v1225_v4 = vmax.f32 %v1193_v47, 0.0  ;;  %v1122_v53 = vand.u32 2147483648, %v2306_v34  ;;  %vm1023_vm0 = vcmp.eq.f32.partialorder %v2336_v12, inf  ;;  %1387 = vrsqrt.f32 %v2371_v13  ;;  %v2407_v7 = vpop.eup %1385  ;;  %v579_v47 = vld [vmem:[#allocation2 + $0x38] sm:$0xff] }
 0x192   :  { %v851_v14 = vsel %vm849_vm11, %v850_v20, %v848_v1  ;;  %v1075_v57 = vsel %vm1073_vm14, %v1074_v11, %v1072_v51  ;;  %vm1121_vm1 = vcmp.eq.f32.partialorder %v2306_v34, 0.0  ;;  %v1020_v44 = vsub.f32 1.5, %v1019_v26 }
 0x193   :  { %1241 = vst.msk [vmem:[%s2645_s6 + $0x48] sm:$0xff] %vm27_vm7, %v1225_v4  ;;  %v891_v52 = vmul.f32 0.5, %v890_v58  ;;  %v939_v50 = vmul.f32 0.5, %v938_v9  ;;  %v1190_v16 = vsub.f32 %v851_v14, %v1075_v57  ;;  %vm1025_vm6 = vcmp.eq.f32.partialorder %v2336_v12, 0.0  ;;  %v656_v4 = vld [vmem:[#allocation3 + $0x18] sm:$0xff] }
 0x194   :  { %v1077_v15 = vmul.f32 %v2407_v7, %v2364_v5  ;;  %v800_v6 = vsel %vm799_vm2, %v2278_v61, %v798_v3  ;;  %v1118_v2 = vmul.f32 %v1117_v46, %v2306_v34  ;;  %v1021_v8 = vmul.f32 %v1382_v30, %v1020_v44  ;;  %v700_v3 = vpop.xlane.xlu2 %699 }
 0x195   :  { %v892_v25 = vsub.f32 1.5, %v891_v52  ;;  %v1222_v23 = vmax.f32 %v1190_v16, 0.0  ;;  %v2422_v29 = vmax.f32 %v747_v62, 1e-16  ;;  %v2424_v31 = vmax.f32 %v739_v0, 1e-16 }
 0x196   :  { %v1078_v27 = vmul.f32 %v2407_v7, %v1077_v15  ;;  %v1022_v20 = vmul.f32 %v1021_v8, %v2336_v12  ;;  %v712_v24 = vmin.f32 %v664_v59, %v692_v49  ;;  %v714_v22 = vmin.f32 %v666_v18, %v696_v33  ;;  %v668_v49 = vld [vmem:[#allocation3 + $0x78] sm:$0xff] }
 0x197   :  { %v893_v32 = vmul.f32 %v1384_v38, %v892_v25  ;;  %v2427_v63 = vpop.eup %1387  ;;  %v940_v35 = vsub.f32 1.5, %v939_v50  ;;  %1238 = vst.msk [vmem:[%s2645_s6 + $0x30] sm:$0xff] %vm27_vm7, %v1222_v23  ;;  %v1026_v30 = vand.u32 2147483648, %v2336_v12  ;;  %vm895_vm8 = vcmp.eq.f32.partialorder %v2342_v45, inf }
 0x198   :  { %1389 = vrsqrt.f32 %v2422_v29  ;;  %v803_v38 = vsel %vm801_vm15, %v802_v21, %v800_v6  ;;  %v1120_v41 = vsel %vm1119_vm9, %v2306_v34, %v1118_v2  ;;  %v1024_v42 = vsel %vm1023_vm0, %v2336_v12, %v1022_v20  ;;  %728 = vst.msk [vmem:[#allocation3 + $0x58] sm:$0xff] %vm27_vm7, %v712_v24  ;;  %v667_v21 = vld [vmem:[#allocation3 + $0x70] sm:$0xff] }
 0x199   :  { %v894_v43 = vmul.f32 %v893_v32, %v2342_v45  ;;  %v1027_v40 = vsel %vm1025_vm6, %v1026_v30, %v1024_v42  ;;  %v898_v36 = vand.u32 2147483648, %v2342_v45  ;;  %v1079_v61 = vmul.f32 0.5, %v1078_v27  ;;  %730 = vst.msk [vmem:[#allocation3 + $0x68] sm:$0xff] %vm27_vm7, %v714_v22 }
 0x19a   :  { %1391 = vrsqrt.f32 %v2424_v31  ;;  %v1186_v11 = vsub.f32 %v803_v38, %v1027_v40  ;;  %vm897_vm13 = vcmp.eq.f32.partialorder %v2342_v45, 0.0  ;;  %v949_v12 = vmul.f32 %v2427_v63, %v2371_v13 }
 0x19b   :  { %v896_v37 = vsel %vm895_vm8, %v2342_v45, %v894_v43  ;;  %v1123_v9 = vsel %vm1121_vm1, %v1122_v53, %v1120_v41  ;;  %v627_v17 = vmax.f32 %v579_v47, %v2361_v48  ;;  %v715_v58 = vmin.f32 %v667_v21, %v698_v54 }
 0x19c   :  { %v899_v1 = vsel %vm897_vm13, %v898_v36, %v896_v37  ;;  %v1218_v46 = vmax.f32 %v1186_v11, 0.0  ;;  %v929_v45 = vmul.f32 %v2276_v60, %v928_v56  ;;  %v941_v14 = vmul.f32 %v2358_v19, %v940_v35 }
 0x19d   :  { %v1194_v26 = vsub.f32 %v899_v1, %v1123_v9  ;;  %v1080_v57 = vsub.f32 1.5, %v1079_v61  ;;  %644 = vst.msk [vmem:[#allocation2 + $0x38] sm:$0xff] %vm27_vm7, %v627_v17  ;;  %v704_v34 = vmin.f32 %v656_v4, %v2405_v55  ;;  %v950_v53 = vmul.f32 %v2427_v63, %v949_v12 }
 0x19e   :  { %v1390_v51 = vpop.eup %1389  ;;  %1234 = vst.msk [vmem:[%s2645_s6 + $0x10] sm:$0xff] %vm27_vm7, %v1218_v46  ;;  %v716_v10 = vmin.f32 %v668_v49, %v700_v3  ;;  %v930_v55 = vmul.f32 %v929_v45, %v2223_v28  ;;  %v942_v62 = vmul.f32 %v941_v14, %v2320_v39  ;;  %vm931_vm3 = vcmp.eq.f32.partialorder %v2223_v28, inf }
 0x19f   :  { %v1226_v48 = vmax.f32 %v1194_v26, 0.0  ;;  %v901_v44 = vmul.f32 %v1390_v51, %v2422_v29  ;;  %v971_v60 = vld [vmem:[#allocation3 + $0x58] sm:$0xff]  ;;  %731 = vst.msk [vmem:[#allocation3 + $0x70] sm:$0xff] %vm27_vm7, %v715_v58  ;;  %v1081_v16 = vmul.f32 %v2407_v7, %v1080_v57  ;;  %v951_v15 = vmul.f32 0.5, %v950_v53 }
 0x1a0   :  { %v2474_v52 = vpop.eup %1391  ;;  %v973_v19 = vld [vmem:[#allocation3 + $0x68] sm:$0xff]  ;;  %v2483_v0 = vmax.f32 %v971_v60, 1e-16  ;;  %720 = vst.msk [vmem:[#allocation3 + $0x18] sm:$0xff] %vm27_vm7, %v704_v34  ;;  %vm943_vm5 = vcmp.eq.f32.partialorder %v2320_v39, inf  ;;  %v932_v6 = vsel %vm931_vm3, %v2223_v28, %v930_v55  ;;  %v934_v7 = vand.u32 2147483648, %v2223_v28 }
 0x1a1   :  { %1242 = vst.msk [vmem:[%s2645_s6 + $0x50] sm:$0xff] %vm27_vm7, %v1226_v48  ;;  %v902_v56 = vmul.f32 %v1390_v51, %v901_v44  ;;  %v2485_v50 = vmax.f32 %v973_v19, 1e-16  ;;  %v805_v59 = vmul.f32 %v2474_v52, %v2424_v31  ;;  %v944_v2 = vsel %vm943_vm5, %v2320_v39, %v942_v62 }
 0x1a2   :  { %732 = vst.msk [vmem:[#allocation3 + $0x78] sm:$0xff] %vm27_vm7, %v716_v10  ;;  %1393 = vrsqrt.f32 %v2483_v0  ;;  %v1082_v8 = vmul.f32 %v1081_v16, %v2364_v5  ;;  %v952_v25 = vsub.f32 1.5, %v951_v15  ;;  %vm933_vm12 = vcmp.eq.f32.partialorder %v2223_v28, 0.0 }
 0x1a3   :  { %v903_v18 = vmul.f32 0.5, %v902_v56  ;;  %1395 = vrsqrt.f32 %v2485_v50  ;;  %v806_v23 = vmul.f32 %v2474_v52, %v805_v59  ;;  %v946_v32 = vand.u32 2147483648, %v2320_v39 }
 0x1a4   :  { %v743_v33 = vld [vmem:[#allocation2 + $0x38] sm:$0xff]  ;;  %v2507_v35 = vsel %vm933_vm12, %v934_v7, %v932_v6  ;;  %vm945_vm10 = vcmp.eq.f32.partialorder %v2320_v39, 0.0  ;;  %vm1083_vm11 = vcmp.eq.f32.partialorder %v2364_v5, inf  ;;  %vm1085_vm2 = vcmp.eq.f32.partialorder %v2364_v5, 0.0 }
 0x1a5   :  { %v2501_v27 = vmax.f32 %v743_v33, 1e-16  ;;  %v904_v24 = vsub.f32 1.5, %v903_v18  ;;  %v2512_v41 = vsel %vm945_vm10, %v946_v32, %v944_v2  ;;  %v1086_v28 = vand.u32 2147483648, %v2364_v5 }
 0x1a6   :  { %v974_v20 = vld [vmem:[#allocation3 + $0x70] sm:$0xff]  ;;  %v1084_v47 = vsel %vm1083_vm11, %v2364_v5, %v1082_v8  ;;  %v953_v39 = vmul.f32 %v2427_v63, %v952_v25  ;;  %v807_v40 = vmul.f32 0.5, %v806_v23  ;;  %v958_v61 = vand.u32 2147483648, %v2371_v13 }
 0x1a7   :  { %v2505_v22 = vmax.f32 %v974_v20, 1e-16  ;;  %1397 = vrsqrt.f32 %v2501_v27  ;;  %v963_v30 = vld [vmem:[#allocation3 + $0x18] sm:$0xff]  ;;  %v905_v21 = vmul.f32 %v1390_v51, %v904_v24  ;;  %vm907_vm4 = vcmp.eq.f32.partialorder %v2422_v29, inf }
 0x1a8   :  { %v1394_v38 = vpop.eup %1393  ;;  %v2522_v11 = vmax.f32 %v963_v30, 1e-16  ;;  %v910_v37 = vand.u32 2147483648, %v2422_v29  ;;  %v2530_v63 = vsel %vm1085_vm2, %v1086_v28, %v1084_v47  ;;  %vm909_vm14 = vcmp.eq.f32.partialorder %v2422_v29, 0.0 }
 0x1a9   :  { %1399 = vrsqrt.f32 %v2505_v22  ;;  %v975_v42 = vld [vmem:[#allocation3 + $0x78] sm:$0xff]  ;;  %v1396_v43 = vpop.eup %1395  ;;  %v1125_v36 = vmul.f32 %v1394_v38, %v2483_v0  ;;  %v814_v9 = vand.u32 2147483648, %v2424_v31  ;;  %v2536_v49 = vmul.f32 %v953_v39, %v2371_v13 }
 0x1aa   :  { %v1149_v54 = vmul.f32 %v1396_v43, %v2485_v50  ;;  %v2526_v4 = vmax.f32 %v975_v42, 1e-16  ;;  %1401 = vrsqrt.f32 %v2522_v11  ;;  %v808_v3 = vsub.f32 1.5, %v807_v40 }
 0x1ab   :  { %v1126_v12 = vmul.f32 %v1394_v38, %v1125_v36  ;;  %v906_v5 = vmul.f32 %v905_v21, %v2422_v29  ;;  %vm1131_vm15 = vcmp.eq.f32.partialorder %v2483_v0, inf  ;;  %vm1133_vm9 = vcmp.eq.f32.partialorder %v2483_v0, 0.0 }
 0x1ac   :  { %v1150_v1 = vmul.f32 %v1396_v43, %v1149_v54  ;;  %1403 = vrsqrt.f32 %v2526_v4  ;;  %v1134_v14 = vand.u32 2147483648, %v2483_v0  ;;  %vm1155_vm0 = vcmp.eq.f32.partialorder %v2485_v50, inf }
 0x1ad   :  { %v1398_v17 = vpop.eup %1397  ;;  %v1127_v46 = vmul.f32 0.5, %v1126_v12  ;;  %vm1157_vm1 = vcmp.eq.f32.partialorder %v2485_v50, 0.0  ;;  %v809_v53 = vmul.f32 %v2474_v52, %v808_v3  ;;  %v1158_v10 = vand.u32 2147483648, %v2485_v50 }
 0x1ae   :  { %v1151_v58 = vmul.f32 0.5, %v1150_v1  ;;  %v853_v51 = vmul.f32 %v1398_v17, %v2501_v27  ;;  %v908_v19 = vsel %vm907_vm4, %v2422_v29, %v906_v5  ;;  %vm859_vm6 = vcmp.eq.f32.partialorder %v2501_v27, inf }
 0x1af   :  { %v1400_v26 = vpop.eup %1399  ;;  %v1128_v45 = vsub.f32 1.5, %v1127_v46  ;;  %vm955_vm8 = vcmp.eq.f32.partialorder %v2371_v13, inf  ;;  %vm861_vm13 = vcmp.eq.f32.partialorder %v2501_v27, 0.0  ;;  %vm811_vm3 = vcmp.eq.f32.partialorder %v2424_v31, inf }
 0x1b0   :  { %v1161_v57 = vmul.f32 %v1400_v26, %v2505_v22  ;;  %v1152_v34 = vsub.f32 1.5, %v1151_v58  ;;  %v854_v48 = vmul.f32 %v1398_v17, %v853_v51  ;;  %v1402_v56 = vpop.eup %1401  ;;  %v862_v6 = vand.u32 2147483648, %v2501_v27 }
 0x1b1   :  { %v1129_v44 = vmul.f32 %v1394_v38, %v1128_v45  ;;  %v1029_v59 = vmul.f32 %v1402_v56, %v2522_v11  ;;  %v911_v2 = vsel %vm909_vm14, %v910_v37, %v908_v19  ;;  %vm813_vm5 = vcmp.eq.f32.partialorder %v2424_v31, 0.0 }
 0x1b2   :  { %v1162_v60 = vmul.f32 %v1400_v26, %v1161_v57  ;;  %v1153_v55 = vmul.f32 %v1396_v43, %v1152_v34  ;;  %v855_v62 = vmul.f32 0.5, %v854_v48  ;;  %v1404_v16 = vpop.eup %1403  ;;  %vm957_vm12 = vcmp.eq.f32.partialorder %v2371_v13, 0.0 }
 0x1b3   :  { %v1130_v15 = vmul.f32 %v1129_v44, %v2483_v0  ;;  %v1173_v7 = vmul.f32 %v1404_v16, %v2526_v4  ;;  %v1030_v23 = vmul.f32 %v1402_v56, %v1029_v59  ;;  %vm1167_vm10 = vcmp.eq.f32.partialorder %v2505_v22, inf }
 0x1b4   :  { %v1163_v52 = vmul.f32 0.5, %v1162_v60  ;;  %v1154_v18 = vmul.f32 %v1153_v55, %v2485_v50  ;;  %v856_v33 = vsub.f32 1.5, %v855_v62  ;;  %v810_v39 = vmul.f32 %v809_v53, %v2424_v31 }
 0x1b5   :  { %v1132_v8 = vsel %vm1131_vm15, %v2483_v0, %v1130_v15  ;;  %v1174_v30 = vmul.f32 %v1404_v16, %v1173_v7  ;;  %v1031_v42 = vmul.f32 0.5, %v1030_v23  ;;  %v1170_v37 = vand.u32 2147483648, %v2505_v22 }
 0x1b6   :  { %v1164_v25 = vsub.f32 1.5, %v1163_v52  ;;  %v1135_v20 = vsel %vm1133_vm9, %v1134_v14, %v1132_v8  ;;  %v1156_v32 = vsel %vm1155_vm0, %v2485_v50, %v1154_v18  ;;  %v857_v24 = vmul.f32 %v1398_v17, %v856_v33 }
 0x1b7   :  { %v1195_v38 = vsub.f32 %v911_v2, %v1135_v20  ;;  %v1159_v29 = vsel %vm1157_vm1, %v1158_v10, %v1156_v32  ;;  %v1175_v47 = vmul.f32 0.5, %v1174_v30  ;;  %v1032_v21 = vsub.f32 1.5, %v1031_v42 }
 0x1b8   :  { %v1165_v28 = vmul.f32 %v1400_v26, %v1164_v25  ;;  %v1197_v43 = vsub.f32 %v2507_v35, %v1159_v29  ;;  %v858_v0 = vmul.f32 %v857_v24, %v2501_v27  ;;  %vm1169_vm11 = vcmp.eq.f32.partialorder %v2505_v22, 0.0 }
 0x1b9   :  { %v1227_v40 = vmax.f32 %v1195_v38, 0.0  ;;  %v1176_v12 = vsub.f32 1.5, %v1175_v47  ;;  %v1033_v17 = vmul.f32 %v1402_v56, %v1032_v21  ;;  %v956_v3 = vsel %vm955_vm8, %v2371_v13, %v2536_v49 }
 0x1ba   :  { %v1166_v36 = vmul.f32 %v1165_v28, %v2505_v22  ;;  %v1229_v54 = vmax.f32 %v1197_v43, 0.0  ;;  %v860_v50 = vsel %vm859_vm6, %v2501_v27, %v858_v0  ;;  %v812_v5 = vsel %vm811_vm3, %v2424_v31, %v810_v39 }
 0x1bb   :  { %1243 = vst.msk [vmem:[%s2645_s6 + $0x58] sm:$0xff] %vm27_vm7, %v1227_v40  ;;  %v863_v35 = vsel %vm861_vm13, %v862_v6, %v860_v50  ;;  %v1177_v27 = vmul.f32 %v1404_v16, %v1176_v12  ;;  %v1034_v58 = vmul.f32 %v1033_v17, %v2522_v11  ;;  %vm1035_vm2 = vcmp.eq.f32.partialorder %v2522_v11, inf }
 0x1bc   :  { %v1168_v1 = vsel %vm1167_vm10, %v2505_v22, %v1166_v36  ;;  %1245 = vst.msk [vmem:[%s2645_s6 + $0x68] sm:$0xff] %vm27_vm7, %v1229_v54  ;;  %v1191_v46 = vsub.f32 %v863_v35, %v2530_v63  ;;  %vm1037_vm4 = vcmp.eq.f32.partialorder %v2522_v11, 0.0  ;;  %v1038_v51 = vand.u32 2147483648, %v2522_v11 }
 0x1bd   :  { %v1171_v26 = vsel %vm1169_vm11, %v1170_v37, %v1168_v1  ;;  %v1178_v45 = vmul.f32 %v1177_v27, %v2526_v4  ;;  %v1036_v14 = vsel %vm1035_vm2, %v2522_v11, %v1034_v58  ;;  %vm1179_vm14 = vcmp.eq.f32.partialorder %v2526_v4, inf }
 0x1be   :  { %v1198_v22 = vsub.f32 %v2512_v41, %v1171_v26  ;;  %v1223_v49 = vmax.f32 %v1191_v46, 0.0  ;;  %v1182_v57 = vand.u32 2147483648, %v2526_v4  ;;  %v815_v41 = vsel %vm813_vm5, %v814_v9, %v812_v5 }
 0x1bf   :  { %v1039_v34 = vsel %vm1037_vm4, %v1038_v51, %v1036_v14  ;;  %v1180_v48 = vsel %vm1179_vm14, %v2526_v4, %v1178_v45  ;;  %vm1181_vm15 = vcmp.eq.f32.partialorder %v2526_v4, 0.0  ;;  %v959_v11 = vsel %vm957_vm12, %v958_v61, %v956_v3 }
 0x1c0   :  { %v1230_v63 = vmax.f32 %v1198_v22, 0.0  ;;  %1239 = vst.msk [vmem:[%s2645_s6 + $0x38] sm:$0xff] %vm27_vm7, %v1223_v49  ;;  %v1187_v31 = vsub.f32 %v815_v41, %v1039_v34  ;;  %v1183_v9 = vsel %vm1181_vm15, %v1182_v57, %v1180_v48 }
 0x1c1   :  { %v1199_v53 = vsub.f32 %v959_v11, %v1183_v9 }
 0x1c2   :  { %1246 = vst.msk [vmem:[%s2645_s6 + $0x70] sm:$0xff] %vm27_vm7, %v1230_v63  ;;  %v1219_v44 = vmax.f32 %v1187_v31, 0.0 }
 0x1c3   :  { %v1231_v10 = vmax.f32 %v1199_v53, 0.0 }
 0x1c4   :  { %1235 = vst.msk [vmem:[%s2645_s6 + $0x18] sm:$0xff] %vm27_vm7, %v1219_v44 }
 0x1c5   :  { %1247 = vst.msk [vmem:[%s2645_s6 + $0x78] sm:$0xff] %vm27_vm7, %v1231_v10 }

</bundles_post_ra>
